<compile_context>
chip_gen: v7x
topology: tpu7x:2x2x1
jax: 0.10.0
libtpu: 0.0.40
codegen_flags: <defaults>
</compile_context>

<pallas_src>
import jax
import jax.numpy as jnp
from jax.experimental import pallas as pl
from jax.experimental.pallas import tpu as pltpu

EPS = 1e-3
_VMEM_LIMIT = 32 * 1024 * 1024  # safe on v5e / v6e / v7x


# ---------------------------------------------------------------------------
# Pallas kernels
# ---------------------------------------------------------------------------
def _matmul_bn_prelu_kernel(x_ref, w_ref, scale_ref, bias_ref, alpha_ref, o_ref):
    """out = PReLU(BN(x @ w)); BN folded into per-channel (scale, bias)."""
    acc = jnp.dot(x_ref[...], w_ref[...], preferred_element_type=jnp.float32)
    y = acc * scale_ref[...] + bias_ref[...]
    o_ref[...] = jnp.where(y >= 0.0, y, alpha_ref[...] * y)


def _cg_fused_kernel(ploc_ref, psur_ref, wloc_ref, wsur_ref,
                     sloc_ref, bloc_ref, aloc_ref,
                     sjl_ref, bjl_ref, ajl_ref,
                     sjs_ref, bjs_ref, ajs_ref,
                     wrl_ref, wrs_ref,
                     sr_ref, br_ref, ar_ref,
                     o_ref):
    """F_loc conv+BN+PReLU, F_sur conv, joint BN+PReLU (split per half, no
    concat), 1x1 reduce conv (split weight) + BN + PReLU — all per M-tile."""
    # F_loc: 3x3 conv + BN + PReLU
    loc = jnp.dot(ploc_ref[...], wloc_ref[...], preferred_element_type=jnp.float32)
    loc = loc * sloc_ref[...] + bloc_ref[...]
    loc = jnp.where(loc >= 0.0, loc, aloc_ref[...] * loc)

    # F_sur: 3x3 dilated conv (no BN / act)
    sur = jnp.dot(psur_ref[...], wsur_ref[...], preferred_element_type=jnp.float32)

    # joint BN + PReLU of cat([loc, sur], channel) applied to each half
    loc = loc * sjl_ref[...] + bjl_ref[...]
    loc = jnp.where(loc >= 0.0, loc, ajl_ref[...] * loc)
    sur = sur * sjs_ref[...] + bjs_ref[...]
    sur = jnp.where(sur >= 0.0, sur, ajs_ref[...] * sur)

    # 1x1 reduce: cat([loc, sur]) @ wred == loc @ wred_top + sur @ wred_bot
    red = jnp.dot(loc.astype(jnp.bfloat16), wrl_ref[...],
                  preferred_element_type=jnp.float32)
    red = red + jnp.dot(sur.astype(jnp.bfloat16), wrs_ref[...],
                        preferred_element_type=jnp.float32)
    red = red * sr_ref[...] + br_ref[...]
    o_ref[...] = jnp.where(red >= 0.0, red, ar_ref[...] * red)


def _attention_kernel(x_ref, w1_ref, w2_ref, o_ref):
    """Squeeze-excite for one batch element: GAP -> fc1 -> relu -> fc2 ->
    sigmoid -> rescale."""
    x = x_ref[...]                                     # (1, HW, C)
    gap = jnp.mean(x, axis=1)                          # (1, C)
    y = jnp.dot(gap, w1_ref[...], preferred_element_type=jnp.float32)
    y = jnp.maximum(y, 0.0)
    y = jnp.dot(y, w2_ref[...], preferred_element_type=jnp.float32)
    y = jax.nn.sigmoid(y)                              # (1, C)
    o_ref[...] = x * y[:, None, :]


# ---------------------------------------------------------------------------
# Wrappers around pallas_call (M-tiled grids)
# ---------------------------------------------------------------------------
def _round_up(n, m):
    return ((n + m - 1) // m) * m


def _tile_rows(M, tm_max=512):
    TM = min(tm_max, _round_up(M, 8))
    return TM, _round_up(M, TM)


def _pad_rows(x, m_pad):
    pad = m_pad - x.shape[0]
    if pad:
        x = jnp.pad(x, ((0, pad), (0, 0)))
    return x


_PARAMS = pltpu.CompilerParams(dimension_semantics=("parallel",),
                               vmem_limit_bytes=_VMEM_LIMIT)


def fused_matmul_bn_prelu(patches, w_bf16, scale, bias, alpha, tm=512):
    M, K = patches.shape
    N = w_bf16.shape[1]
    TM, Mp = _tile_rows(M, tm)
    x = _pad_rows(patches, Mp).astype(jnp.bfloat16)
    out = pl.pallas_call(
        _matmul_bn_prelu_kernel,
        out_shape=jax.ShapeDtypeStruct((Mp, N), jnp.float32),
        grid=(Mp // TM,),
        in_specs=[
            pl.BlockSpec((TM, K), lambda i: (i, 0)),
            pl.BlockSpec((K, N), lambda i: (0, 0)),
            pl.BlockSpec((1, N), lambda i: (0, 0)),
            pl.BlockSpec((1, N), lambda i: (0, 0)),
            pl.BlockSpec((1, N), lambda i: (0, 0)),
        ],
        out_specs=pl.BlockSpec((TM, N), lambda i: (i, 0)),
        compiler_params=_PARAMS,
    )(x, w_bf16, scale, bias, alpha)
    return out[:M]


def fused_loc_sur_join_reduce(p_loc, p_sur, p, tm=512):
    M, K = p_loc.shape
    nOut = p["wloc_mat"].shape[1]
    TM, Mp = _tile_rows(M, tm)
    ploc = _pad_rows(p_loc, Mp).astype(jnp.bfloat16)
    psur = _pad_rows(p_sur, Mp).astype(jnp.bfloat16)

    patch_spec = pl.BlockSpec((TM, K), lambda i: (i, 0))
    w_spec = pl.BlockSpec((K, nOut), lambda i: (0, 0))
    red_spec = pl.BlockSpec((nOut, nOut), lambda i: (0, 0))

    def vec():
        return pl.BlockSpec((1, nOut), lambda i: (0, 0))

    out = pl.pallas_call(
        _cg_fused_kernel,
        out_shape=jax.ShapeDtypeStruct((Mp, nOut), jnp.float32),
        grid=(Mp // TM,),
        in_specs=[
            patch_spec, patch_spec,            # p_loc, p_sur tiles
            w_spec, w_spec,                    # wloc, wsur
            vec(), vec(), vec(),               # sloc, bloc, aloc
            vec(), vec(), vec(),               # sj_loc, bj_loc, aj_loc
            vec(), vec(), vec(),               # sj_sur, bj_sur, aj_sur
            red_spec, red_spec,                # wred_loc, wred_sur
            vec(), vec(), vec(),               # sr, br, ar
        ],
        out_specs=pl.BlockSpec((TM, nOut), lambda i: (i, 0)),
        compiler_params=_PARAMS,
    )(ploc, psur, p["wloc_mat"], p["wsur_mat"],
      p["sloc"], p["bloc"], p["aloc"],
      p["sj_loc"], p["bj_loc"], p["aj_loc"],
      p["sj_sur"], p["bj_sur"], p["aj_sur"],
      p["wred_loc"], p["wred_sur"],
      p["sr"], p["br"], p["ar"])
    return out[:M]


def attention(x, w1, w2):
    B, HW, C = x.shape
    hid = w1.shape[1]
    return pl.pallas_call(
        _attention_kernel,
        out_shape=jax.ShapeDtypeStruct((B, HW, C), jnp.float32),
        grid=(B,),
        in_specs=[
            pl.BlockSpec((1, HW, C), lambda b: (b, 0, 0)),
            pl.BlockSpec((C, hid), lambda b: (0, 0)),
            pl.BlockSpec((hid, C), lambda b: (0, 0)),
        ],
        out_specs=pl.BlockSpec((1, HW, C), lambda b: (b, 0, 0)),
        compiler_params=_PARAMS,
    )(x, w1, w2)


# ---------------------------------------------------------------------------
# Glue: im2col patch extraction, weight reshaping, BN folding (plain JAX)
# ---------------------------------------------------------------------------
def im2col(x, k, stride, dilation, padding):
    """x: NHWC (static python ints for k/stride/dilation/padding).
    Returns ((B*Ho*Wo, k*k*C), (B, Ho, Wo)). Matches PyTorch Conv2d."""
    B, H, W, C = x.shape
    xp = jnp.pad(x, ((0, 0), (padding, padding), (padding, padding), (0, 0)))
    Ho = (H + 2 * padding - dilation * (k - 1) - 1) // stride + 1
    Wo = (W + 2 * padding - dilation * (k - 1) - 1) // stride + 1
    cols = []
    for i in range(k):            # kh-major, kw, then Cin — matches weight reshape
        for j in range(k):
            cols.append(
                xp[:, i * dilation: i * dilation + stride * (Ho - 1) + 1: stride,
                      j * dilation: j * dilation + stride * (Wo - 1) + 1: stride, :])
    patches = jnp.concatenate(cols, axis=-1)           # (B, Ho, Wo, k*k*C)
    return patches.reshape(B * Ho * Wo, k * k * C), (B, Ho, Wo)


def conv_w_to_mat(w):
    """(Cout, Cin, kH, kW) -> (kH*kW*Cin, Cout), matching im2col column order."""
    cout = w.shape[0]
    return jnp.transpose(w, (2, 3, 1, 0)).reshape(-1, cout)


def fold_bn(gamma, beta, mean, var, eps=EPS):
    scale = gamma / jnp.sqrt(var + eps)
    bias = beta - mean * scale
    return scale.reshape(1, -1), bias.reshape(1, -1)


# ---------------------------------------------------------------------------
# Deterministic parameter construction (shapes from the module's __init__)
# ---------------------------------------------------------------------------
def init_params(key, nIn, nOut, reduction=16):
    ks = list(jax.random.split(key, 12))

    def conv_w(k, cout, cin, ksz):
        fan_in = cin * ksz * ksz
        return jax.random.normal(k, (cout, cin, ksz, ksz), jnp.float32) / jnp.sqrt(fan_in)

    def bn(k, c):
        k1, k2, k3, k4 = jax.random.split(k, 4)
        gamma = 1.0 + 0.1 * jax.random.normal(k1, (c,), jnp.float32)
        beta = 0.1 * jax.random.normal(k2, (c,), jnp.float32)
        mean = 0.1 * jax.random.normal(k3, (c,), jnp.float32)
        var = 0.5 + jax.random.uniform(k4, (c,), jnp.float32)
        return fold_bn(gamma, beta, mean, var)

    def prelu_alpha(k, c):
        return (0.25 + 0.05 * jax.random.normal(k, (c,), jnp.float32)).reshape(1, -1)

    p = {}
    # conv1x1 = ConvTAGpara(nIn, nOut, 3, stride=2)
    p["w1_mat"] = conv_w_to_mat(conv_w(ks[0], nOut, nIn, 3)).astype(jnp.bfloat16)
    p["s1"], p["b1"] = bn(ks[1], nOut)
    p["a1"] = prelu_alpha(ks[2], nOut)
    # F_loc = ConvTAGpara(nOut, nOut, 3, 1)
    p["wloc_mat"] = conv_w_to_mat(conv_w(ks[3], nOut, nOut, 3)).astype(jnp.bfloat16)
    p["sloc"], p["bloc"] = bn(ks[4], nOut)
    p["aloc"] = prelu_alpha(ks[5], nOut)
    # F_sur = Conv2d(nOut, nOut, 3, padding=d, dilation=d, bias=False)
    p["wsur_mat"] = conv_w_to_mat(conv_w(ks[6], nOut, nOut, 3)).astype(jnp.bfloat16)
    # bn + act on concatenated features (2*nOut channels), split into halves
    sj, bj = bn(ks[7], 2 * nOut)
    aj = prelu_alpha(ks[8], 2 * nOut)
    p["sj_loc"], p["sj_sur"] = sj[:, :nOut], sj[:, nOut:]
    p["bj_loc"], p["bj_sur"] = bj[:, :nOut], bj[:, nOut:]
    p["aj_loc"], p["aj_sur"] = aj[:, :nOut], aj[:, nOut:]
    # reduce = ConvTAGpara(2*nOut, nOut, 1, 1): split weight into loc/sur blocks
    wred = conv_w_to_mat(conv_w(ks[9], nOut, 2 * nOut, 1)).astype(jnp.bfloat16)
    p["wred_loc"], p["wred_sur"] = wred[:nOut], wred[nOut:]
    p["sr"], p["br"] = bn(ks[10], nOut)
    p["ar"] = prelu_alpha(ks[11], nOut)
    # attention: Linear(nOut, nOut//reduction) and Linear(nOut//reduction, nOut)
    kf1, kf2 = jax.random.split(jax.random.fold_in(key, 99), 2)
    hid = max(1, nOut // reduction)
    fc1 = jax.random.normal(kf1, (hid, nOut), jnp.float32) / jnp.sqrt(nOut)   # torch (out,in)
    fc2 = jax.random.normal(kf2, (nOut, hid), jnp.float32) / jnp.sqrt(hid)
    p["w_fc1"] = fc1.T          # (nOut, hid)
    p["w_fc2"] = fc2.T          # (hid, nOut)
    return p


# ---------------------------------------------------------------------------
# Forward pass of ContextGuidedBlock_Down
# ---------------------------------------------------------------------------
def context_guided_block_down(x_nchw, p, *, dilation=2):
    x = jnp.transpose(x_nchw, (0, 2, 3, 1))                      # NCHW -> NHWC

    # conv1x1: 3x3 stride-2 conv + BN + PReLU (downsample)
    patches, (B, Ho, Wo) = im2col(x, 3, 2, 1, 1)
    out = fused_matmul_bn_prelu(patches, p["w1_mat"], p["s1"], p["b1"], p["a1"])
    nOut = out.shape[1]
    out_nhwc = out.reshape(B, Ho, Wo, nOut)

    # F_loc + F_sur + joint BN/PReLU + 1x1 reduce + BN/PReLU: one fused kernel
    p_loc, _ = im2col(out_nhwc, 3, 1, 1, 1)
    p_sur, _ = im2col(out_nhwc, 3, 1, dilation, dilation)
    red = fused_loc_sur_join_reduce(p_loc, p_sur, p)

    # attention (squeeze-excite), tiled over batch
    red3 = red.reshape(B, Ho * Wo, nOut)
    att = attention(red3, p["w_fc1"], p["w_fc2"])

    out_nhwc = att.reshape(B, Ho, Wo, nOut)
    return jnp.transpose(out_nhwc, (0, 3, 1, 2))                 # back to NCHW


if __name__ == "__main__":
    B, nIn, nOut, H, W = 2, 8, 32, 16, 16   # nOut >= reduction(16) so fc hidden >= 1
    key = jax.random.PRNGKey(0)
    k_x, k_p = jax.random.split(key)
    x = jax.random.normal(k_x, (B, nIn, H, W), jnp.float32)
    params = init_params(k_p, nIn, nOut)

    fwd = jax.jit(context_guided_block_down, static_argnames=("dilation",))
    y = fwd(x, params, dilation=2)
    jax.block_until_ready(y)
    assert y.shape == (B, nOut, H // 2, W // 2), y.shape
    print("KERNEL_OK")
</pallas_src>

<mosaic_0001>
module attributes {stable_mosaic.version = 11 : i64} {
  func.func @_matmul_bn_prelu_kernel(%arg0: i32, %arg1: memref<128x72xbf16, #tpu.memory_space<vmem>>, %arg2: memref<72x32xbf16, #tpu.memory_space<vmem>>, %arg3: memref<1x32xf32, #tpu.memory_space<vmem>>, %arg4: memref<1x32xf32, #tpu.memory_space<vmem>>, %arg5: memref<1x32xf32, #tpu.memory_space<vmem>>, %arg6: memref<128x32xf32, #tpu.memory_space<vmem>>) attributes {dimension_semantics = [#tpu.dimension_semantics<parallel>], iteration_bounds = array<i64: 1>, scalar_prefetch = 0 : i64, scratch_operands = 0 : i64, tpu.core_type = #tpu.core_type<tc>, window_params = [{transform_indices = @transform_0, window_bounds = array<i64: 128, 72>}, {pipeline_mode = #tpu.pipeline_mode<synchronous>, transform_indices = @transform_1, window_bounds = array<i64: 72, 32>}, {pipeline_mode = #tpu.pipeline_mode<synchronous>, transform_indices = @transform_2, window_bounds = array<i64: 1, 32>}, {pipeline_mode = #tpu.pipeline_mode<synchronous>, transform_indices = @transform_3, window_bounds = array<i64: 1, 32>}, {pipeline_mode = #tpu.pipeline_mode<synchronous>, transform_indices = @transform_4, window_bounds = array<i64: 1, 32>}, {transform_indices = @transform_5, window_bounds = array<i64: 128, 32>}]} {
    %c0 = arith.constant 0 : index
    %c0_0 = arith.constant 0 : index
    %0 = vector.load %arg1[%c0, %c0_0] : memref<128x72xbf16, #tpu.memory_space<vmem>>, vector<128x72xbf16>
    %c0_1 = arith.constant 0 : index
    %c0_2 = arith.constant 0 : index
    %1 = vector.load %arg2[%c0_1, %c0_2] : memref<72x32xbf16, #tpu.memory_space<vmem>>, vector<72x32xbf16>
    %cst = arith.constant dense<0.000000e+00> : vector<128x32xf32>
    %2 = tpu.matmul %0, %1, %cst {dimension_numbers = #tpu.dot_dimension_numbers<[1], [0], [0], [1], [0, 0, 1, 1], [], []>} : vector<128x72xbf16>, vector<72x32xbf16>, vector<128x32xf32> -> vector<128x32xf32>
    %c0_3 = arith.constant 0 : index
    %c0_4 = arith.constant 0 : index
    %3 = vector.load %arg3[%c0_3, %c0_4] : memref<1x32xf32, #tpu.memory_space<vmem>>, vector<1x32xf32>
    %4 = vector.broadcast %3 : vector<1x32xf32> to vector<128x32xf32>
    %5 = arith.mulf %2, %4 : vector<128x32xf32>
    %c0_5 = arith.constant 0 : index
    %c0_6 = arith.constant 0 : index
    %6 = vector.load %arg4[%c0_5, %c0_6] : memref<1x32xf32, #tpu.memory_space<vmem>>, vector<1x32xf32>
    %7 = vector.broadcast %6 : vector<1x32xf32> to vector<128x32xf32>
    %8 = arith.addf %5, %7 : vector<128x32xf32>
    %cst_7 = arith.constant 0.000000e+00 : f32
    %9 = vector.broadcast %cst_7 : f32 to vector<128x32xf32>
    %10 = arith.cmpf oge, %8, %9 : vector<128x32xf32>
    %c0_8 = arith.constant 0 : index
    %c0_9 = arith.constant 0 : index
    %11 = vector.load %arg5[%c0_8, %c0_9] : memref<1x32xf32, #tpu.memory_space<vmem>>, vector<1x32xf32>
    %12 = vector.broadcast %11 : vector<1x32xf32> to vector<128x32xf32>
    %13 = arith.mulf %12, %8 : vector<128x32xf32>
    %14 = arith.select %10, %8, %13 : vector<128x32xi1>, vector<128x32xf32>
    %c0_10 = arith.constant 0 : index
    %c0_11 = arith.constant 0 : index
    %15 = vector.load %arg6[%c0_10, %c0_11] : memref<128x32xf32, #tpu.memory_space<vmem>>, vector<128x32xf32>
    tpu.vector_store %arg6[%c0_10, %c0_11], %14 {strides = array<i32>} : memref<128x32xf32, #tpu.memory_space<vmem>>, vector<128x32xf32>,
    return
  }
  func.func @transform_0(%arg0: i32) -> (i32, i32) {
    %c0_i32 = arith.constant 0 : i32
    %c0_i32_0 = arith.constant 0 : i32
    return %arg0, %c0_i32 : i32, i32
  }
  func.func @transform_1(%arg0: i32) -> (i32, i32) {
    %c0_i32 = arith.constant 0 : i32
    %c0_i32_0 = arith.constant 0 : i32
    %c0_i32_1 = arith.constant 0 : i32
    return %c0_i32, %c0_i32_0 : i32, i32
  }
  func.func @transform_2(%arg0: i32) -> (i32, i32) {
    %c0_i32 = arith.constant 0 : i32
    %c0_i32_0 = arith.constant 0 : i32
    %c0_i32_1 = arith.constant 0 : i32
    return %c0_i32, %c0_i32_0 : i32, i32
  }
  func.func @transform_3(%arg0: i32) -> (i32, i32) {
    %c0_i32 = arith.constant 0 : i32
    %c0_i32_0 = arith.constant 0 : i32
    %c0_i32_1 = arith.constant 0 : i32
    return %c0_i32, %c0_i32_0 : i32, i32
  }
  func.func @transform_4(%arg0: i32) -> (i32, i32) {
    %c0_i32 = arith.constant 0 : i32
    %c0_i32_0 = arith.constant 0 : i32
    %c0_i32_1 = arith.constant 0 : i32
    return %c0_i32, %c0_i32_0 : i32, i32
  }
  func.func @transform_5(%arg0: i32) -> (i32, i32) {
    %c0_i32 = arith.constant 0 : i32
    %c0_i32_0 = arith.constant 0 : i32
    return %arg0, %c0_i32 : i32, i32
  }
}

module attributes {stable_mosaic.version = 11 : i64} {
  func.func @_attention_kernel(%arg0: i32, %arg1: memref<1x64x32xf32, #tpu.memory_space<vmem>>, %arg2: memref<32x2xf32, #tpu.memory_space<vmem>>, %arg3: memref<2x32xf32, #tpu.memory_space<vmem>>, %arg4: memref<1x64x32xf32, #tpu.memory_space<vmem>>) attributes {dimension_semantics = [#tpu.dimension_semantics<parallel>], iteration_bounds = array<i64: 2>, scalar_prefetch = 0 : i64, scratch_operands = 0 : i64, tpu.core_type = #tpu.core_type<tc>, window_params = [{transform_indices = @transform_0, window_bounds = array<i64: 1, 64, 32>}, {pipeline_mode = #tpu.pipeline_mode<synchronous>, transform_indices = @transform_1, window_bounds = array<i64: 32, 2>}, {pipeline_mode = #tpu.pipeline_mode<synchronous>, transform_indices = @transform_2, window_bounds = array<i64: 2, 32>}, {transform_indices = @transform_3, window_bounds = array<i64: 1, 64, 32>}]} {
    %c0 = arith.constant 0 : index
    %c0_0 = arith.constant 0 : index
    %c0_1 = arith.constant 0 : index
    %0 = vector.load %arg1[%c0, %c0_0, %c0_1] : memref<1x64x32xf32, #tpu.memory_space<vmem>>, vector<1x64x32xf32>
    %cst = arith.constant dense<0.000000e+00> : vector<1x32xf32>
    %1 = vector.multi_reduction <add>, %0, %cst [1] : vector<1x64x32xf32> to vector<1x32xf32>
    %cst_2 = arith.constant 6.400000e+01 : f32
    %2 = vector.broadcast %cst_2 : f32 to vector<1x32xf32>
    %3 = arith.divf %1, %2 : vector<1x32xf32>
    %c0_3 = arith.constant 0 : index
    %c0_4 = arith.constant 0 : index
    %4 = vector.load %arg2[%c0_3, %c0_4] : memref<32x2xf32, #tpu.memory_space<vmem>>, vector<32x2xf32>
    %cst_5 = arith.constant dense<0.000000e+00> : vector<1x2xf32>
    %5 = tpu.matmul %3, %4, %cst_5 {dimension_numbers = #tpu.dot_dimension_numbers<[1], [0], [0], [1], [0, 0, 1, 1], [], []>} : vector<1x32xf32>, vector<32x2xf32>, vector<1x2xf32> -> vector<1x2xf32>
    %cst_6 = arith.constant 0.000000e+00 : f32
    %6 = vector.broadcast %cst_6 : f32 to vector<1x2xf32>
    %7 = arith.maximumf %5, %6 : vector<1x2xf32>
    %c0_7 = arith.constant 0 : index
    %c0_8 = arith.constant 0 : index
    %8 = vector.load %arg3[%c0_7, %c0_8] : memref<2x32xf32, #tpu.memory_space<vmem>>, vector<2x32xf32>
    %cst_9 = arith.constant dense<0.000000e+00> : vector<1x32xf32>
    %9 = tpu.matmul %7, %8, %cst_9 {dimension_numbers = #tpu.dot_dimension_numbers<[1], [0], [0], [1], [0, 0, 1, 1], [], []>} : vector<1x2xf32>, vector<2x32xf32>, vector<1x32xf32> -> vector<1x32xf32>
    %10 = arith.negf %9 : vector<1x32xf32>
    %11 = math.exp %10 : vector<1x32xf32>
    %cst_10 = arith.constant 1.000000e+00 : f32
    %12 = vector.broadcast %cst_10 : f32 to vector<1x32xf32>
    %13 = arith.addf %12, %11 : vector<1x32xf32>
    %14 = arith.divf %12, %13 : vector<1x32xf32>
    %15 = vector.shape_cast %14 : vector<1x32xf32> to vector<1x1x32xf32>
    %16 = vector.broadcast %15 : vector<1x1x32xf32> to vector<1x64x32xf32>
    %17 = arith.mulf %0, %16 : vector<1x64x32xf32>
    %c0_11 = arith.constant 0 : index
    %c0_12 = arith.constant 0 : index
    %c0_13 = arith.constant 0 : index
    %18 = vector.load %arg4[%c0_11, %c0_12, %c0_13] : memref<1x64x32xf32, #tpu.memory_space<vmem>>, vector<1x64x32xf32>
    tpu.vector_store %arg4[%c0_11, %c0_12, %c0_13], %17 {strides = array<i32>} : memref<1x64x32xf32, #tpu.memory_space<vmem>>, vector<1x64x32xf32>,
    return
  }
  func.func @transform_0(%arg0: i32) -> (i32, i32, i32) {
    %c0_i32 = arith.constant 0 : i32
    %c0_i32_0 = arith.constant 0 : i32
    %c0_i32_1 = arith.constant 0 : i32
    return %arg0, %c0_i32, %c0_i32_0 : i32, i32, i32
  }
  func.func @transform_1(%arg0: i32) -> (i32, i32) {
    %c0_i32 = arith.constant 0 : i32
    %c0_i32_0 = arith.constant 0 : i32
    %c0_i32_1 = arith.constant 0 : i32
    return %c0_i32, %c0_i32_0 : i32, i32
  }
  func.func @transform_2(%arg0: i32) -> (i32, i32) {
    %c0_i32 = arith.constant 0 : i32
    %c0_i32_0 = arith.constant 0 : i32
    %c0_i32_1 = arith.constant 0 : i32
    return %c0_i32, %c0_i32_0 : i32, i32
  }
  func.func @transform_3(%arg0: i32) -> (i32, i32, i32) {
    %c0_i32 = arith.constant 0 : i32
    %c0_i32_0 = arith.constant 0 : i32
    %c0_i32_1 = arith.constant 0 : i32
    return %arg0, %c0_i32, %c0_i32_0 : i32, i32, i32
  }
}

module attributes {stable_mosaic.version = 11 : i64} {
  func.func @_cg_fused_kernel(%arg0: i32, %arg1: memref<128x288xbf16, #tpu.memory_space<vmem>>, %arg2: memref<128x288xbf16, #tpu.memory_space<vmem>>, %arg3: memref<288x32xbf16, #tpu.memory_space<vmem>>, %arg4: memref<288x32xbf16, #tpu.memory_space<vmem>>, %arg5: memref<1x32xf32, #tpu.memory_space<vmem>>, %arg6: memref<1x32xf32, #tpu.memory_space<vmem>>, %arg7: memref<1x32xf32, #tpu.memory_space<vmem>>, %arg8: memref<1x32xf32, #tpu.memory_space<vmem>>, %arg9: memref<1x32xf32, #tpu.memory_space<vmem>>, %arg10: memref<1x32xf32, #tpu.memory_space<vmem>>, %arg11: memref<1x32xf32, #tpu.memory_space<vmem>>, %arg12: memref<1x32xf32, #tpu.memory_space<vmem>>, %arg13: memref<1x32xf32, #tpu.memory_space<vmem>>, %arg14: memref<32x32xbf16, #tpu.memory_space<vmem>>, %arg15: memref<32x32xbf16, #tpu.memory_space<vmem>>, %arg16: memref<1x32xf32, #tpu.memory_space<vmem>>, %arg17: memref<1x32xf32, #tpu.memory_space<vmem>>, %arg18: memref<1x32xf32, #tpu.memory_space<vmem>>, %arg19: memref<128x32xf32, #tpu.memory_space<vmem>>) attributes {dimension_semantics = [#tpu.dimension_semantics<parallel>], iteration_bounds = array<i64: 1>, scalar_prefetch = 0 : i64, scratch_operands = 0 : i64, tpu.core_type = #tpu.core_type<tc>, window_params = [{transform_indices = @transform_0, window_bounds = array<i64: 128, 288>}, {transform_indices = @transform_1, window_bounds = array<i64: 128, 288>}, {pipeline_mode = #tpu.pipeline_mode<synchronous>, transform_indices = @transform_2, window_bounds = array<i64: 288, 32>}, {pipeline_mode = #tpu.pipeline_mode<synchronous>, transform_indices = @transform_3, window_bounds = array<i64: 288, 32>}, {pipeline_mode = #tpu.pipeline_mode<synchronous>, transform_indices = @transform_4, window_bounds = array<i64: 1, 32>}, {pipeline_mode = #tpu.pipeline_mode<synchronous>, transform_indices = @transform_5, window_bounds = array<i64: 1, 32>}, {pipeline_mode = #tpu.pipeline_mode<synchronous>, transform_indices = @transform_6, window_bounds = array<i64: 1, 32>}, {pipeline_mode = #tpu.pipeline_mode<synchronous>, transform_indices = @transform_7, window_bounds = array<i64: 1, 32>}, {pipeline_mode = #tpu.pipeline_mode<synchronous>, transform_indices = @transform_8, window_bounds = array<i64: 1, 32>}, {pipeline_mode = #tpu.pipeline_mode<synchronous>, transform_indices = @transform_9, window_bounds = array<i64: 1, 32>}, {pipeline_mode = #tpu.pipeline_mode<synchronous>, transform_indices = @transform_10, window_bounds = array<i64: 1, 32>}, {pipeline_mode = #tpu.pipeline_mode<synchronous>, transform_indices = @transform_11, window_bounds = array<i64: 1, 32>}, {pipeline_mode = #tpu.pipeline_mode<synchronous>, transform_indices = @transform_12, window_bounds = array<i64: 1, 32>}, {pipeline_mode = #tpu.pipeline_mode<synchronous>, transform_indices = @transform_13, window_bounds = array<i64: 32, 32>}, {pipeline_mode = #tpu.pipeline_mode<synchronous>, transform_indices = @transform_14, window_bounds = array<i64: 32, 32>}, {pipeline_mode = #tpu.pipeline_mode<synchronous>, transform_indices = @transform_15, window_bounds = array<i64: 1, 32>}, {pipeline_mode = #tpu.pipeline_mode<synchronous>, transform_indices = @transform_16, window_bounds = array<i64: 1, 32>}, {pipeline_mode = #tpu.pipeline_mode<synchronous>, transform_indices = @transform_17, window_bounds = array<i64: 1, 32>}, {transform_indices = @transform_18, window_bounds = array<i64: 128, 32>}]} {
    %c0 = arith.constant 0 : index
    %c0_0 = arith.constant 0 : index
    %0 = vector.load %arg1[%c0, %c0_0] : memref<128x288xbf16, #tpu.memory_space<vmem>>, vector<128x288xbf16>
    %c0_1 = arith.constant 0 : index
    %c0_2 = arith.constant 0 : index
    %1 = vector.load %arg3[%c0_1, %c0_2] : memref<288x32xbf16, #tpu.memory_space<vmem>>, vector<288x32xbf16>
    %cst = arith.constant dense<0.000000e+00> : vector<128x32xf32>
    %2 = tpu.matmul %0, %1, %cst {dimension_numbers = #tpu.dot_dimension_numbers<[1], [0], [0], [1], [0, 0, 1, 1], [], []>} : vector<128x288xbf16>, vector<288x32xbf16>, vector<128x32xf32> -> vector<128x32xf32>
    %c0_3 = arith.constant 0 : index
    %c0_4 = arith.constant 0 : index
    %3 = vector.load %arg5[%c0_3, %c0_4] : memref<1x32xf32, #tpu.memory_space<vmem>>, vector<1x32xf32>
    %4 = vector.broadcast %3 : vector<1x32xf32> to vector<128x32xf32>
    %5 = arith.mulf %2, %4 : vector<128x32xf32>
    %c0_5 = arith.constant 0 : index
    %c0_6 = arith.constant 0 : index
    %6 = vector.load %arg6[%c0_5, %c0_6] : memref<1x32xf32, #tpu.memory_space<vmem>>, vector<1x32xf32>
    %7 = vector.broadcast %6 : vector<1x32xf32> to vector<128x32xf32>
    %8 = arith.addf %5, %7 : vector<128x32xf32>
    %cst_7 = arith.constant 0.000000e+00 : f32
    %9 = vector.broadcast %cst_7 : f32 to vector<128x32xf32>
    %10 = arith.cmpf oge, %8, %9 : vector<128x32xf32>
    %c0_8 = arith.constant 0 : index
    %c0_9 = arith.constant 0 : index
    %11 = vector.load %arg7[%c0_8, %c0_9] : memref<1x32xf32, #tpu.memory_space<vmem>>, vector<1x32xf32>
    %12 = vector.broadcast %11 : vector<1x32xf32> to vector<128x32xf32>
    %13 = arith.mulf %12, %8 : vector<128x32xf32>
    %14 = arith.select %10, %8, %13 : vector<128x32xi1>, vector<128x32xf32>
    %c0_10 = arith.constant 0 : index
    %c0_11 = arith.constant 0 : index
    %15 = vector.load %arg2[%c0_10, %c0_11] : memref<128x288xbf16, #tpu.memory_space<vmem>>, vector<128x288xbf16>
    %c0_12 = arith.constant 0 : index
    %c0_13 = arith.constant 0 : index
    %16 = vector.load %arg4[%c0_12, %c0_13] : memref<288x32xbf16, #tpu.memory_space<vmem>>, vector<288x32xbf16>
    %cst_14 = arith.constant dense<0.000000e+00> : vector<128x32xf32>
    %17 = tpu.matmul %15, %16, %cst_14 {dimension_numbers = #tpu.dot_dimension_numbers<[1], [0], [0], [1], [0, 0, 1, 1], [], []>} : vector<128x288xbf16>, vector<288x32xbf16>, vector<128x32xf32> -> vector<128x32xf32>
    %c0_15 = arith.constant 0 : index
    %c0_16 = arith.constant 0 : index
    %18 = vector.load %arg8[%c0_15, %c0_16] : memref<1x32xf32, #tpu.memory_space<vmem>>, vector<1x32xf32>
    %19 = vector.broadcast %18 : vector<1x32xf32> to vector<128x32xf32>
    %20 = arith.mulf %14, %19 : vector<128x32xf32>
    %c0_17 = arith.constant 0 : index
    %c0_18 = arith.constant 0 : index
    %21 = vector.load %arg9[%c0_17, %c0_18] : memref<1x32xf32, #tpu.memory_space<vmem>>, vector<1x32xf32>
    %22 = vector.broadcast %21 : vector<1x32xf32> to vector<128x32xf32>
    %23 = arith.addf %20, %22 : vector<128x32xf32>
    %cst_19 = arith.constant 0.000000e+00 : f32
    %24 = vector.broadcast %cst_19 : f32 to vector<128x32xf32>
    %25 = arith.cmpf oge, %23, %24 : vector<128x32xf32>
    %c0_20 = arith.constant 0 : index
    %c0_21 = arith.constant 0 : index
    %26 = vector.load %arg10[%c0_20, %c0_21] : memref<1x32xf32, #tpu.memory_space<vmem>>, vector<1x32xf32>
    %27 = vector.broadcast %26 : vector<1x32xf32> to vector<128x32xf32>
    %28 = arith.mulf %27, %23 : vector<128x32xf32>
    %29 = arith.select %25, %23, %28 : vector<128x32xi1>, vector<128x32xf32>
    %c0_22 = arith.constant 0 : index
    %c0_23 = arith.constant 0 : index
    %30 = vector.load %arg11[%c0_22, %c0_23] : memref<1x32xf32, #tpu.memory_space<vmem>>, vector<1x32xf32>
    %31 = vector.broadcast %30 : vector<1x32xf32> to vector<128x32xf32>
    %32 = arith.mulf %17, %31 : vector<128x32xf32>
    %c0_24 = arith.constant 0 : index
    %c0_25 = arith.constant 0 : index
    %33 = vector.load %arg12[%c0_24, %c0_25] : memref<1x32xf32, #tpu.memory_space<vmem>>, vector<1x32xf32>
    %34 = vector.broadcast %33 : vector<1x32xf32> to vector<128x32xf32>
    %35 = arith.addf %32, %34 : vector<128x32xf32>
    %cst_26 = arith.constant 0.000000e+00 : f32
    %36 = vector.broadcast %cst_26 : f32 to vector<128x32xf32>
    %37 = arith.cmpf oge, %35, %36 : vector<128x32xf32>
    %c0_27 = arith.constant 0 : index
    %c0_28 = arith.constant 0 : index
    %38 = vector.load %arg13[%c0_27, %c0_28] : memref<1x32xf32, #tpu.memory_space<vmem>>, vector<1x32xf32>
    %39 = vector.broadcast %38 : vector<1x32xf32> to vector<128x32xf32>
    %40 = arith.mulf %39, %35 : vector<128x32xf32>
    %41 = arith.select %37, %35, %40 : vector<128x32xi1>, vector<128x32xf32>
    %42 = arith.truncf %29 : vector<128x32xf32> to vector<128x32xbf16>
    %c0_29 = arith.constant 0 : index
    %c0_30 = arith.constant 0 : index
    %43 = vector.load %arg14[%c0_29, %c0_30] : memref<32x32xbf16, #tpu.memory_space<vmem>>, vector<32x32xbf16>
    %cst_31 = arith.constant dense<0.000000e+00> : vector<128x32xf32>
    %44 = tpu.matmul %42, %43, %cst_31 {dimension_numbers = #tpu.dot_dimension_numbers<[1], [0], [0], [1], [0, 0, 1, 1], [], []>} : vector<128x32xbf16>, vector<32x32xbf16>, vector<128x32xf32> -> vector<128x32xf32>
    %45 = arith.truncf %41 : vector<128x32xf32> to vector<128x32xbf16>
    %c0_32 = arith.constant 0 : index
    %c0_33 = arith.constant 0 : index
    %46 = vector.load %arg15[%c0_32, %c0_33] : memref<32x32xbf16, #tpu.memory_space<vmem>>, vector<32x32xbf16>
    %cst_34 = arith.constant dense<0.000000e+00> : vector<128x32xf32>
    %47 = tpu.matmul %45, %46, %cst_34 {dimension_numbers = #tpu.dot_dimension_numbers<[1], [0], [0], [1], [0, 0, 1, 1], [], []>} : vector<128x32xbf16>, vector<32x32xbf16>, vector<128x32xf32> -> vector<128x32xf32>
    %48 = arith.addf %44, %47 : vector<128x32xf32>
    %c0_35 = arith.constant 0 : index
    %c0_36 = arith.constant 0 : index
    %49 = vector.load %arg16[%c0_35, %c0_36] : memref<1x32xf32, #tpu.memory_space<vmem>>, vector<1x32xf32>
    %50 = vector.broadcast %49 : vector<1x32xf32> to vector<128x32xf32>
    %51 = arith.mulf %48, %50 : vector<128x32xf32>
    %c0_37 = arith.constant 0 : index
    %c0_38 = arith.constant 0 : index
    %52 = vector.load %arg17[%c0_37, %c0_38] : memref<1x32xf32, #tpu.memory_space<vmem>>, vector<1x32xf32>
    %53 = vector.broadcast %52 : vector<1x32xf32> to vector<128x32xf32>
    %54 = arith.addf %51, %53 : vector<128x32xf32>
    %cst_39 = arith.constant 0.000000e+00 : f32
    %55 = vector.broadcast %cst_39 : f32 to vector<128x32xf32>
    %56 = arith.cmpf oge, %54, %55 : vector<128x32xf32>
    %c0_40 = arith.constant 0 : index
    %c0_41 = arith.constant 0 : index
    %57 = vector.load %arg18[%c0_40, %c0_41] : memref<1x32xf32, #tpu.memory_space<vmem>>, vector<1x32xf32>
    %58 = vector.broadcast %57 : vector<1x32xf32> to vector<128x32xf32>
    %59 = arith.mulf %58, %54 : vector<128x32xf32>
    %60 = arith.select %56, %54, %59 : vector<128x32xi1>, vector<128x32xf32>
    %c0_42 = arith.constant 0 : index
    %c0_43 = arith.constant 0 : index
    %61 = vector.load %arg19[%c0_42, %c0_43] : memref<128x32xf32, #tpu.memory_space<vmem>>, vector<128x32xf32>
    tpu.vector_store %arg19[%c0_42, %c0_43], %60 {strides = array<i32>} : memref<128x32xf32, #tpu.memory_space<vmem>>, vector<128x32xf32>,
    return
  }
  func.func @transform_0(%arg0: i32) -> (i32, i32) {
    %c0_i32 = arith.constant 0 : i32
    %c0_i32_0 = arith.constant 0 : i32
    return %arg0, %c0_i32 : i32, i32
  }
  func.func @transform_1(%arg0: i32) -> (i32, i32) {
    %c0_i32 = arith.constant 0 : i32
    %c0_i32_0 = arith.constant 0 : i32
    return %arg0, %c0_i32 : i32, i32
  }
  func.func @transform_2(%arg0: i32) -> (i32, i32) {
    %c0_i32 = arith.constant 0 : i32
    %c0_i32_0 = arith.constant 0 : i32
    %c0_i32_1 = arith.constant 0 : i32
    return %c0_i32, %c0_i32_0 : i32, i32
  }
  func.func @transform_3(%arg0: i32) -> (i32, i32) {
    %c0_i32 = arith.constant 0 : i32
    %c0_i32_0 = arith.constant 0 : i32
    %c0_i32_1 = arith.constant 0 : i32
    return %c0_i32, %c0_i32_0 : i32, i32
  }
  func.func @transform_4(%arg0: i32) -> (i32, i32) {
    %c0_i32 = arith.constant 0 : i32
    %c0_i32_0 = arith.constant 0 : i32
    %c0_i32_1 = arith.constant 0 : i32
    return %c0_i32, %c0_i32_0 : i32, i32
  }
  func.func @transform_5(%arg0: i32) -> (i32, i32) {
    %c0_i32 = arith.constant 0 : i32
    %c0_i32_0 = arith.constant 0 : i32
    %c0_i32_1 = arith.constant 0 : i32
    return %c0_i32, %c0_i32_0 : i32, i32
  }
  func.func @transform_6(%arg0: i32) -> (i32, i32) {
    %c0_i32 = arith.constant 0 : i32
    %c0_i32_0 = arith.constant 0 : i32
    %c0_i32_1 = arith.constant 0 : i32
    return %c0_i32, %c0_i32_0 : i32, i32
  }
  func.func @transform_7(%arg0: i32) -> (i32, i32) {
    %c0_i32 = arith.constant 0 : i32
    %c0_i32_0 = arith.constant 0 : i32
    %c0_i32_1 = arith.constant 0 : i32
    return %c0_i32, %c0_i32_0 : i32, i32
  }
  func.func @transform_8(%arg0: i32) -> (i32, i32) {
    %c0_i32 = arith.constant 0 : i32
    %c0_i32_0 = arith.constant 0 : i32
    %c0_i32_1 = arith.constant 0 : i32
    return %c0_i32, %c0_i32_0 : i32, i32
  }
  func.func @transform_9(%arg0: i32) -> (i32, i32) {
    %c0_i32 = arith.constant 0 : i32
    %c0_i32_0 = arith.constant 0 : i32
    %c0_i32_1 = arith.constant 0 : i32
    return %c0_i32, %c0_i32_0 : i32, i32
  }
  func.func @transform_10(%arg0: i32) -> (i32, i32) {
    %c0_i32 = arith.constant 0 : i32
    %c0_i32_0 = arith.constant 0 : i32
    %c0_i32_1 = arith.constant 0 : i32
    return %c0_i32, %c0_i32_0 : i32, i32
  }
  func.func @transform_11(%arg0: i32) -> (i32, i32) {
    %c0_i32 = arith.constant 0 : i32
    %c0_i32_0 = arith.constant 0 : i32
    %c0_i32_1 = arith.constant 0 : i32
    return %c0_i32, %c0_i32_0 : i32, i32
  }
  func.func @transform_12(%arg0: i32) -> (i32, i32) {
    %c0_i32 = arith.constant 0 : i32
    %c0_i32_0 = arith.constant 0 : i32
    %c0_i32_1 = arith.constant 0 : i32
    return %c0_i32, %c0_i32_0 : i32, i32
  }
  func.func @transform_13(%arg0: i32) -> (i32, i32) {
    %c0_i32 = arith.constant 0 : i32
    %c0_i32_0 = arith.constant 0 : i32
    %c0_i32_1 = arith.constant 0 : i32
    return %c0_i32, %c0_i32_0 : i32, i32
  }
  func.func @transform_14(%arg0: i32) -> (i32, i32) {
    %c0_i32 = arith.constant 0 : i32
    %c0_i32_0 = arith.constant 0 : i32
    %c0_i32_1 = arith.constant 0 : i32
    return %c0_i32, %c0_i32_0 : i32, i32
  }
  func.func @transform_15(%arg0: i32) -> (i32, i32) {
    %c0_i32 = arith.constant 0 : i32
    %c0_i32_0 = arith.constant 0 : i32
    %c0_i32_1 = arith.constant 0 : i32
    return %c0_i32, %c0_i32_0 : i32, i32
  }
  func.func @transform_16(%arg0: i32) -> (i32, i32) {
    %c0_i32 = arith.constant 0 : i32
    %c0_i32_0 = arith.constant 0 : i32
    %c0_i32_1 = arith.constant 0 : i32
    return %c0_i32, %c0_i32_0 : i32, i32
  }
  func.func @transform_17(%arg0: i32) -> (i32, i32) {
    %c0_i32 = arith.constant 0 : i32
    %c0_i32_0 = arith.constant 0 : i32
    %c0_i32_1 = arith.constant 0 : i32
    return %c0_i32, %c0_i32_0 : i32, i32
  }
  func.func @transform_18(%arg0: i32) -> (i32, i32) {
    %c0_i32 = arith.constant 0 : i32
    %c0_i32_0 = arith.constant 0 : i32
    return %arg0, %c0_i32 : i32, i32
  }
}

</mosaic_0001>

<bundles_post_ra>
// kernel: context_guided_block_down.3
= control target key start
LH: loop header
LB: loop body
LE: loop exit
PB: predicated region body
PF: predicated region fallthrough
CT: control target
= control target key end

     0   :  { %vm113_vm0 = vcmask 588800   ;;  %vm138_vm1 = vcmask 1043456   ;;  %vm340_vm2 = vcmask 261120   ;;  %s653_s1 = inlined_call_operand.vmem [shape: bf16[72,32], index: 1, kind: input, shape index: {}]   ;;  %s654_s0 = inlined_call_operand.vmem [shape: bf16[128,72], index: 0, kind: input, shape index: {}]   ;;  %s655_s2 = inlined_call_operand.vmem [shape: f32[1,32], index: 2, kind: input, shape index: {}]   ;;  %s656_s3 = inlined_call_operand.vmem [shape: f32[1,32], index: 3, kind: input, shape index: {}]   ;;  %s657_s4 = inlined_call_operand.vmem [shape: f32[1,32], index: 4, kind: input, shape index: {}]   ;;  %s658_s5 = inlined_call_operand.vmem [shape: f32[128,32], index: 5, kind: output, shape index: {}]  }
   0x1   :  { %v436_v0 = vld [vmem:[%s653_s1] sm:$0xff]   ;;  %v437_v1 = vld [vmem:[%s653_s1 + $0x8] sm:$0xff]   ;;  %v438_v2 = vld [vmem:[%s653_s1 + $0x10] sm:$0xff]  }
   0x2   :  { %398 = vmatprep.subr.bf16.mxu0 %v436_v0  ;;  %424 = vmatprep.subr.bf16.mxu1 %v436_v0  ;;  %v441_v3 = vld [vmem:[%s654_s0] sm:$0xff]   ;;  %v439_v5 = vld [vmem:[%s653_s1 + $0x18] sm:$0xff]   ;;  %v443_v8 = vld [vmem:[%s654_s0 + $0x8] sm:$0xff]  }
   0x3   :  { %399 = vmatpush3.bf16.msra.mxu0 %v436_v0  ;;  %429 = vmatpush3.bf16.msra.mxu1 %v436_v0  ;;  %v442_v4 = vld [vmem:[%s654_s0 + $0x20] sm:$0xff]   ;;  %v444_v9 = vld [vmem:[%s654_s0 + $0x28] sm:$0xff]   ;;  %v445_v10 = vld [vmem:[%s654_s0 + $0x10] sm:$0xff]  }
   0x4   :  { %400 = vmatprep.subr.bf16.mxu0 %v437_v1  ;;  %425 = vmatprep.subr.bf16.mxu1 %v437_v1  ;;  %v440_v6 = vld [vmem:[%s653_s1 + $0x20] ss:$0 sps:$4 sm:$0xff]   ;;  %v446_v11 = vld [vmem:[%s654_s0 + $0x30] sm:$0xff]   ;;  %v447_v12 = vld [vmem:[%s654_s0 + $0x18] sm:$0xff]  }
   0x5   :  { %408 = vmatprep.mubr.msk.bf16.mxu0 %vm113_vm0, %v441_v3  ;;  %416 = vmatprep.mubr.msk.bf16.mxu1 %vm113_vm0, %v442_v4  ;;  %v140_v7 = vsel %vm138_vm1, %v440_v6, 0  ;;  %v448_v13 = vld [vmem:[%s654_s0 + $0x38] sm:$0xff]   ;;  %v529_v14 = vld [vmem:[%s655_s2] ss:$0 sm:$0xff] }
   0x6   :  { %v534_v16 = vld [vmem:[%s656_s3] ss:$0 sm:$0xff] }
   0x7   :  { %401 = vmatpush3.bf16.msra.mxu0 %v437_v1  ;;  %430 = vmatpush3.bf16.msra.mxu1 %v437_v1  ;;  %v541_v22 = vld [vmem:[%s657_s4] ss:$0 sm:$0xff] }
   0x8   :  { %402 = vmatprep.subr.bf16.mxu0 %v438_v2  ;;  %426 = vmatprep.subr.bf16.mxu1 %v438_v2 }
   0xb   :  { %403 = vmatpush3.bf16.msra.mxu0 %v438_v2  ;;  %431 = vmatpush3.bf16.msra.mxu1 %v438_v2 }
   0xc   :  { %404 = vmatprep.subr.bf16.mxu0 %v439_v5  ;;  %427 = vmatprep.subr.bf16.mxu1 %v439_v5 }
   0xf   :  { %405 = vmatpush3.bf16.msra.mxu0 %v439_v5  ;;  %432 = vmatpush3.bf16.msra.mxu1 %v439_v5 }
  0x10   :  { %434 = vmatprep.subr.msk.bf16.mxu0 %vm138_vm1, %v440_v6  ;;  %435 = vmatprep.subr.msk.bf16.mxu1 %vm138_vm1, %v440_v6 }
  0x13   :  { %407 = vmatpush3.bf16.msra.mxu0 %v140_v7  ;;  %433 = vmatpush3.bf16.msra.mxu1 %v140_v7 }
  0x16   :  { %409 = vmatmul.mubr.msk.bf16.vlgmr.msra.gmra.mrb[0].mxu0 %vm113_vm0, %v443_v8  ;;  %417 = vmatmul.mubr.msk.bf16.vlgmr.msra.gmra.mrb[0].mxu1 %vm113_vm0, %v444_v9 }
  0x17   :  { %412 = vmatprep.mubr.msk.bf16.mxu0 %vm113_vm0, %v445_v10  ;;  %420 = vmatprep.mubr.msk.bf16.mxu1 %vm113_vm0, %v446_v11 }
  0x1e   :  { %413 = vmatmul.mubr.msk.bf16.gmra.mrb[4].mxu0 %vm113_vm0, %v447_v12  ;;  %421 = vmatmul.mubr.msk.bf16.gmra.mrb[4].mxu1 %vm113_vm0, %v448_v13 }
  0xe9   :  { %v410_v15 = vpop.f32.mrb[0].mxu0  ;;  %v418_v17 = vpop.f32.mrb[0].mxu1 }
  0xea   :  { %v248_v18 = vmul.f32 %v410_v15, %v529_v14  ;;  %v256_v19 = vmul.f32 %v418_v17, %v529_v14  ;;  %v176_v20 = vpop.f32.mrb[1].mxu0  ;;  %v208_v21 = vpop.f32.mrb[1].mxu1 }
  0xeb   :  { %v246_v23 = vmul.f32 %v529_v14, %v176_v20  ;;  %v254_v24 = vmul.f32 %v529_v14, %v208_v21  ;;  %v411_v25 = vpop.f32.mrb[2].mxu0  ;;  %v419_v26 = vpop.f32.mrb[2].mxu1 }
  0xec   :  { %v271_v27 = vadd.f32 %v534_v16, %v248_v18  ;;  %v279_v28 = vadd.f32 %v534_v16, %v256_v19  ;;  %v249_v29 = vmul.f32 %v411_v25, %v529_v14  ;;  %v257_v30 = vmul.f32 %v419_v26, %v529_v14  ;;  %v179_v31 = vpop.f32.mrb[3].mxu0  ;;  %v211_v32 = vpop.f32.mrb[3].mxu1 }
  0xed   :  { %v269_v33 = vadd.f32 %v534_v16, %v246_v23  ;;  %v277_v34 = vadd.f32 %v534_v16, %v254_v24  ;;  %v247_v35 = vmul.f32 %v529_v14, %v179_v31  ;;  %v255_v36 = vmul.f32 %v529_v14, %v211_v32 }
  0xee   :  { %vm287_vm3 = vcmp.ge.f32.partialorder %v271_v27, 0.0  ;;  %v310_v37 = vmul.f32 %v541_v22, %v271_v27  ;;  %vm295_vm4 = vcmp.ge.f32.partialorder %v279_v28, 0.0  ;;  %v318_v38 = vmul.f32 %v541_v22, %v279_v28 }
  0xef   :  { %vm285_vm5 = vcmp.ge.f32.partialorder %v269_v33, 0.0  ;;  %v308_v39 = vmul.f32 %v541_v22, %v269_v33  ;;  %vm293_vm6 = vcmp.ge.f32.partialorder %v277_v34, 0.0  ;;  %v316_v40 = vmul.f32 %v541_v22, %v277_v34 }
  0xf0   :  { %v326_v41 = vsel %vm287_vm3, %v271_v27, %v310_v37  ;;  %v334_v42 = vsel %vm295_vm4, %v279_v28, %v318_v38  ;;  %v272_v43 = vadd.f32 %v534_v16, %v249_v29  ;;  %v280_v44 = vadd.f32 %v534_v16, %v257_v30 }
  0xf1   :  { %343 = vst.msk [vmem:[%s658_s5 + $0x10] sm:$0xff] %vm340_vm2, %v326_v41  ;;  %351 = vst.msk [vmem:[%s658_s5 + $0x50] sm:$0xff] %vm340_vm2, %v334_v42  ;;  %v324_v45 = vsel %vm285_vm5, %v269_v33, %v308_v39  ;;  %v332_v46 = vsel %vm293_vm6, %v277_v34, %v316_v40  ;;  %v270_v47 = vadd.f32 %v534_v16, %v247_v35  ;;  %v414_v49 = vpop.f32.mrb[4].mxu0  ;;  %v422_v50 = vpop.f32.mrb[4].mxu1 }
  0xf2   :  { %v278_v48 = vadd.f32 %v534_v16, %v255_v36  ;;  %341 = vst.msk [vmem:[%s658_s5] sm:$0xff] %vm340_vm2, %v324_v45  ;;  %349 = vst.msk [vmem:[%s658_s5 + $0x40] sm:$0xff] %vm340_vm2, %v332_v46  ;;  %vm288_vm7 = vcmp.ge.f32.partialorder %v272_v43, 0.0  ;;  %v311_v51 = vmul.f32 %v541_v22, %v272_v43  ;;  %vm296_vm8 = vcmp.ge.f32.partialorder %v280_v44, 0.0  ;;  %v192_v53 = vpop.f32.mrb[5].mxu0  ;;  %v224_v54 = vpop.f32.mrb[5].mxu1 }
  0xf3   :  { %v319_v52 = vmul.f32 %v541_v22, %v280_v44  ;;  %vm286_vm9 = vcmp.ge.f32.partialorder %v270_v47, 0.0  ;;  %v309_v55 = vmul.f32 %v541_v22, %v270_v47  ;;  %v415_v57 = vpop.f32.mrb[6].mxu0  ;;  %v423_v58 = vpop.f32.mrb[6].mxu1  ;;  %v252_v61 = vmul.f32 %v414_v49, %v529_v14 }
  0xf4   :  { %vm294_vm10 = vcmp.ge.f32.partialorder %v278_v48, 0.0  ;;  %v317_v56 = vmul.f32 %v541_v22, %v278_v48  ;;  %v327_v59 = vsel %vm288_vm7, %v272_v43, %v311_v51  ;;  %v260_v62 = vmul.f32 %v422_v50, %v529_v14  ;;  %v195_v63 = vpop.f32.mrb[7].mxu0  ;;  %v227_v0 = vpop.f32.mrb[7].mxu1 }
  0xf5   :  { %v335_v60 = vsel %vm296_vm8, %v280_v44, %v319_v52  ;;  %344 = vst.msk [vmem:[%s658_s5 + $0x18] sm:$0xff] %vm340_vm2, %v327_v59  ;;  %v325_v1 = vsel %vm286_vm9, %v270_v47, %v309_v55  ;;  %v250_v3 = vmul.f32 %v529_v14, %v192_v53  ;;  %v258_v4 = vmul.f32 %v529_v14, %v224_v54 }
  0xf6   :  { %352 = vst.msk [vmem:[%s658_s5 + $0x58] sm:$0xff] %vm340_vm2, %v335_v60  ;;  %v333_v2 = vsel %vm294_vm10, %v278_v48, %v317_v56  ;;  %342 = vst.msk [vmem:[%s658_s5 + $0x8] sm:$0xff] %vm340_vm2, %v325_v1  ;;  %v275_v5 = vadd.f32 %v534_v16, %v252_v61  ;;  %v283_v6 = vadd.f32 %v534_v16, %v260_v62 }
  0xf7   :  { %350 = vst.msk [vmem:[%s658_s5 + $0x48] sm:$0xff] %vm340_vm2, %v333_v2  ;;  %v253_v7 = vmul.f32 %v415_v57, %v529_v14  ;;  %v261_v8 = vmul.f32 %v423_v58, %v529_v14  ;;  %v273_v9 = vadd.f32 %v534_v16, %v250_v3  ;;  %v281_v10 = vadd.f32 %v534_v16, %v258_v4 }
  0xf8   :  { %v251_v11 = vmul.f32 %v529_v14, %v195_v63  ;;  %v259_v12 = vmul.f32 %v529_v14, %v227_v0  ;;  %vm291_vm11 = vcmp.ge.f32.partialorder %v275_v5, 0.0  ;;  %v314_v13 = vmul.f32 %v541_v22, %v275_v5 }
  0xf9   :  { %vm299_vm12 = vcmp.ge.f32.partialorder %v283_v6, 0.0  ;;  %v322_v15 = vmul.f32 %v541_v22, %v283_v6  ;;  %vm289_vm13 = vcmp.ge.f32.partialorder %v273_v9, 0.0  ;;  %v312_v17 = vmul.f32 %v541_v22, %v273_v9 }
  0xfa   :  { %vm297_vm14 = vcmp.ge.f32.partialorder %v281_v10, 0.0  ;;  %v320_v18 = vmul.f32 %v541_v22, %v281_v10  ;;  %v330_v19 = vsel %vm291_vm11, %v275_v5, %v314_v13  ;;  %v276_v21 = vadd.f32 %v534_v16, %v253_v7 }
  0xfb   :  { %v338_v20 = vsel %vm299_vm12, %v283_v6, %v322_v15  ;;  %v284_v23 = vadd.f32 %v534_v16, %v261_v8  ;;  %347 = vst.msk [vmem:[%s658_s5 + $0x30] sm:$0xff] %vm340_vm2, %v330_v19  ;;  %v328_v14 = vsel %vm289_vm13, %v273_v9, %v312_v17  ;;  %v274_v25 = vadd.f32 %v534_v16, %v251_v11 }
  0xfc   :  { %355 = vst.msk [vmem:[%s658_s5 + $0x70] sm:$0xff] %vm340_vm2, %v338_v20  ;;  %v336_v24 = vsel %vm297_vm14, %v281_v10, %v320_v18  ;;  %v282_v26 = vadd.f32 %v534_v16, %v259_v12  ;;  %345 = vst.msk [vmem:[%s658_s5 + $0x20] sm:$0xff] %vm340_vm2, %v328_v14  ;;  %vm292_vm15 = vcmp.ge.f32.partialorder %v276_v21, 0.0  ;;  %v315_v27 = vmul.f32 %v541_v22, %v276_v21 }
  0xfd   :  { %353 = vst.msk [vmem:[%s658_s5 + $0x60] sm:$0xff] %vm340_vm2, %v336_v24  ;;  %vm300_vm0 = vcmp.ge.f32.partialorder %v284_v23, 0.0  ;;  %v323_v28 = vmul.f32 %v541_v22, %v284_v23  ;;  %vm290_vm1 = vcmp.ge.f32.partialorder %v274_v25, 0.0  ;;  %v313_v29 = vmul.f32 %v541_v22, %v274_v25 }
  0xfe   :  { %vm298_vm3 = vcmp.ge.f32.partialorder %v282_v26, 0.0  ;;  %v321_v16 = vmul.f32 %v541_v22, %v282_v26  ;;  %v331_v30 = vsel %vm292_vm15, %v276_v21, %v315_v27 }
  0xff   :  { %v339_v31 = vsel %vm300_vm0, %v284_v23, %v323_v28  ;;  %348 = vst.msk [vmem:[%s658_s5 + $0x38] sm:$0xff] %vm340_vm2, %v331_v30  ;;  %v329_v32 = vsel %vm290_vm1, %v274_v25, %v313_v29 }
 0x100   :  { %356 = vst.msk [vmem:[%s658_s5 + $0x78] sm:$0xff] %vm340_vm2, %v339_v31  ;;  %v337_v33 = vsel %vm298_vm3, %v282_v26, %v321_v16  ;;  %346 = vst.msk [vmem:[%s658_s5 + $0x28] sm:$0xff] %vm340_vm2, %v329_v32 }
 0x101   :  { %354 = vst.msk [vmem:[%s658_s5 + $0x68] sm:$0xff] %vm340_vm2, %v337_v33 }

// kernel: context_guided_block_down.5
= control target key start
LH: loop header
LB: loop body
LE: loop exit
PB: predicated region body
PF: predicated region fallthrough
CT: control target
= control target key end

     0   :  { %8 = vsyncpa [#allocation3], 0  ;;  %s780_s0 = inlined_call_operand.vmem [shape: f32[2,64,32], index: 0, kind: input, shape index: {}]   ;;  %s781_s1 = inlined_call_operand.vmem [shape: f32[32,2], index: 1, kind: input, shape index: {}]   ;;  %s782_s2 = inlined_call_operand.vmem [shape: f32[2,32], index: 2, kind: input, shape index: {}]   ;;  %s783_s3 = inlined_call_operand.hbm [shape: f32[2,64,32], index: 3, kind: output, shape index: {}]  }
   0x1   :  { %10 = vsyncpa [#allocation3 + $0x1], 0  ;;  %s645_s12 = smov 0   ;;  %s647_s13 = smov 0  }
   0x2   :  { %s649_s14 = smov 0   ;;  %s651_s15 = smov 0  }
   0x3 LB: > { %s666_s16 = sadd.s32 4294967295, %s617_s15   ;;  %s460_s17 = sadd.s32 4294967294, %s617_s15   ;;  %s617_s15 = sphi %s651_s15, %s789_s15   ;;  %s613_s14 = sphi %s649_s14, %s788_s14   ;;  %s609_s13 = sphi %s647_s13, %s787_s13   ;;  %s605_s12 = sphi %s645_s12, %s786_s12  }
   0x4   : > { %s670_s18 = sadd.s32 1, %s617_s15   ;;  %s91_s19 = sadd.s32 1, %s613_s14 }
   0x5   : > { %s88_s20 = ssub.s32 %s617_s15, %s670_s18  ;;  %p101_p0 = scmp.ne.s32.totalorder %s613_s14, %s609_s13 }
   0x6   : > { %p89_p1 = scmp.eq.s32.totalorder %s88_s20, 0  ;;  %p102_p2 = scmp.eq.s32.totalorder %s666_s16, 1 }
   0x7   : > { %p107_p3 = scmp.ne.s32.totalorder %s609_s13, %s605_s12  ;;  %p108_p4 = scmp.eq.s32.totalorder %s460_s17, 1 }
   0x8   : > { %s681_s21 = scalar_select %p89_p1, %s613_s14, %s91_s19  }
   0x9   : > { %p683_p5 = por %p102_p2, %p101_p0  ;;  %p687_p6 = por %p108_p4, %p107_p3 }
   0xa   : > { %p463_p7 = scmp.ge.s32.totalorder %s617_s15, 1  ;;  %p140_p8 = scmp.lt.s32.totalorder %s617_s15, 3 }
   0xc   : > { %p141_p9 = pnand %p463_p7, %p140_p8 }
   0xd   : > { %v201_v0 = vld [vmem:[%s781_s1] sm:$0xff] (!%p141_p9)  ;;  %v202_v1 = vld [vmem:[%s781_s1 + $0x8] sm:$0xff] (!%p141_p9)  ;;  %v203_v2 = vld [vmem:[%s781_s1 + $0x10] sm:$0xff] (!%p141_p9)  ;;  %v619_v3 = vmov (!%p141_p9), 0.0|0.0   ;;  %vm620_vm0 = vmmov (!%p141_p9), 0   ;;  %v621_v6 = vmov (!%p141_p9), 0.0   ;;  %v364_v47 = vlaneseq (!%p141_p9) }
   0xe   : > { %144 = sbr.rel (%p141_p9) target bundleno = 529 (0x211), region = 32  ;;  %501 = vmatprep.subr.bf16.mxu0 (!%p141_p9), %v619_v3  ;;  %v502_v4 = vpack.c.bf16 (!%p141_p9), %v202_v1, %v201_v0  ;;  %v204_v5 = vld [vmem:[%s781_s1 + $0x18] sm:$0xff] (!%p141_p9)  ;;  %493 = vmatprep.mubr.msk.f32.mxu0 (!%p141_p9), %vm620_vm0, %v621_v6  ;;  %p164_p10 = scmp.lt.s32.totalorder (!%p141_p9), %s666_s16, 1  ;;  %vm177_vm1 = vcmask (!%p141_p9), 261120   ;;  %v279_v38 = vld [vmem:[%s782_s2] sm:$0x3] (!%p141_p9) }
   0xf   : > { %496 = vmatprep.subr.mxu1 (!%p141_p9), %v621_v6  ;;  %498 = vmatprep.mubr.msk.f32.mxu1 (!%p141_p9), %vm620_vm0, %v621_v6  ;;  %v505_v7 = vpack.c.bf16 (!%p141_p9), %v204_v5, %v203_v2  ;;  %vm284_vm2 = vcmask (!%p141_p9), 1041408   ;;  %vm280_vm3 = vcmask (!%p141_p9), 15360   ;;  %s161_s17 = sand.u32 (!%p141_p9), 1, %s609_s13   ;;  %v365_v48 = vshrl.u32 (!%p141_p9), %v364_v47, 7  ;;  %s477_s20 = sshll.u32 (!%p141_p9), %s666_s16, 10 }
  0x10   : > { %503 = vmatpush3.bf16.msra.mxu0 (!%p141_p9), %v502_v4  ;;  %497 = vmatpush3.msk.msra.mxu1 (!%p141_p9), %vm284_vm2, %v279_v38  ;;  %s464_s19 = sshll.u32 (!%p141_p9), %s161_s17, 6  ;;  %s727_s28 = scalar_lea.hbm (!%p141_p9), %s783_s3, %s477_s20 }
  0x11   : > { %504 = vmatprep.subr.bf16.mxu0 (!%p141_p9), %v619_v3  ;;  %v366_v49 = vsub.s32 (!%p141_p9), 0, %v365_v48  ;;  %s163_s24 = scalar_lea.vmem (!%p141_p9), [#allocation2], %s464_s19  ;;  %s622_s30 = smov (!%p141_p9), [#allocation2]  }
  0x12   : > { %s398_s25 = sshll.u32 (!%p141_p9), %s163_s24, 4  ;;  %s559_s4 = sshll.u32 (!%p141_p9), %s622_s30, 4  ;;  %s729_s25 = int_to_ptr.vmem [resolvable:$true] %s398_s25  ;;  %s560_s4 = int_to_ptr.vmem [resolvable:$false] %s559_s4 }
  0x13   : > { %s555_s29 = scalar_lea.vmem (!%p141_p9), %s729_s25, 1024  ;;  %p562_p0 = scmp.lt.s32.totalorder (!%p141_p9), %s729_s25, %s560_s4 }
  0x14   : > { %506 = vmatpush3.bf16.msra.mxu0 (!%p141_p9), %v505_v7  ;;  %p556_p11 = scmp.ne.s32.totalorder (!%p141_p9), %s729_s25, %s555_s29 }
  0x15   : > { %s165_s5 = scalar_select %p164_p10, %s666_s16, 1 }
  0x16   : > { %s739_s16 = scalar_lea.sflag [#allocation3], %s161_s17  ;;  %p557_p12 = pnand %p556_p11, %p683_p5 }
  0x17   : > { %s476_s6 = sshll.u32 %s165_s5, 6  ;;  %s561_s5 = scalar_lea.vmem %s560_s4, 2048 }
  0x18   : > { %s168_s9 = scalar_lea.vmem %s780_s0, %s476_s6  ;;  %p558_p13 = pneg %p557_p12 }
  0x19   : > { %v169_v8 = vld [vmem:[%s168_s9] sm:$0xff]  ;;  %v170_v9 = vld [vmem:[%s168_s9 + $0x8] sm:$0xff]  ;;  %v171_v10 = vld [vmem:[%s168_s9 + $0x10] sm:$0xff]  ;;  %p563_p1 = scmp.lt.s32.totalorder %s561_s5, %s555_s29 }
  0x1a   : > { %v172_v11 = vld [vmem:[%s168_s9 + $0x18] sm:$0xff]  ;;  %v178_v12 = vsel %vm177_vm1, %v169_v8, 0.0  ;;  %v179_v13 = vsel %vm177_vm1, %v170_v9, 0.0  ;;  %v181_v14 = vsel %vm177_vm1, %v171_v10, 0.0  ;;  %v173_v15 = vld [vmem:[%s168_s9 + $0x20] sm:$0xff]  ;;  %v174_v18 = vld [vmem:[%s168_s9 + $0x28] sm:$0xff] }
  0x1b   : > { %v180_v16 = vadd.f32 %v179_v13, %v178_v12  ;;  %v183_v17 = vsel %vm177_vm1, %v172_v11, 0.0  ;;  %v185_v20 = vsel %vm177_vm1, %v173_v15, 0.0  ;;  %v175_v21 = vld [vmem:[%s168_s9 + $0x30] sm:$0xff]  ;;  %v187_v23 = vsel %vm177_vm1, %v174_v18, 0.0  ;;  %v176_v24 = vld [vmem:[%s168_s9 + $0x38] sm:$0xff]  ;;  %p564_p2 = por %p563_p1, %p562_p0 }
  0x1c   : > { %v189_v26 = vsel %vm177_vm1, %v175_v21, 0.0  ;;  %v191_v28 = vsel %vm177_vm1, %v176_v24, 0.0 }
  0x1d   : > { %v182_v19 = vadd.f32 %v181_v14, %v180_v16  ;;  %p565_p3 = pnand %p564_p2, %p558_p13 }
  0x1f   : > { %v184_v22 = vadd.f32 %v183_v17, %v182_v19 }
  0x21   : > { %v186_v25 = vadd.f32 %v185_v20, %v184_v22 }
  0x23   : > { %v188_v27 = vadd.f32 %v187_v23, %v186_v25 }
  0x25   : > { %v190_v29 = vadd.f32 %v189_v26, %v188_v27 }
  0x27   : > { %v192_v30 = vadd.f32 %v191_v28, %v190_v29 }
  0x29   : > { %v193_v31 = vrot.slane %v192_v30, 4 }
  0x2b   : > { %v194_v32 = vadd.f32 %v193_v31, %v192_v30 }
  0x2d   : > { %v195_v33 = vrot.slane %v194_v32, 2 }
  0x2f   : > { %v196_v34 = vadd.f32 %v195_v33, %v194_v32 }
  0x31   : > { %v197_v35 = vrot.slane %v196_v34, 1 }
  0x33   : > { %v198_v36 = vadd.f32 %v197_v35, %v196_v34 }
  0x35   : > { %v200_v37 = vmul.f32 0.015625, %v198_v36 }
  0x37   : > { %494 = vmatmul.mubr.msk.f32.vlgmr.msra.gmra.mrb[0].mxu0 %vm177_vm1, %v200_v37 }
 0x10a   : > { %v274_v39 = vpop.f32.mrb[0].mxu0 }
 0x10b   : > { %v278_v40 = vmax.f32 %v274_v39, 0.0  ;;  %v495_v41 = vpop.f32.mrb[1].mxu0 }
 0x10d   : > { %499 = vmatmul.mubr.msk.f32.vlgmr.msra.gmra.mrb[0].mxu1 %vm280_vm3, %v278_v40 }
 0x1e0   : > { %v354_v42 = vpop.f32.mrb[0].mxu1 }
 0x1e1   : > { %v470_v43 = vmul.f32 -1.442695, %v354_v42  ;;  %v500_v44 = vpop.f32.mrb[1].mxu1 }
 0x1e3   : > { %551 = vpow2.f32 %v470_v43 }
 0x1ed   : > { %v552_v45 = vpop.eup %551 }
 0x1ee   : > { %v361_v46 = vadd.f32 1.0, %v552_v45 }
 0x1f0   : > { %553 = vrcp.f32 %v361_v46 }
 0x1fa   : > { %v554_v50 = vpop.eup %553 }
 0x1fb   : > { %v367_v51 = vrot.slane %v554_v50, %v366_v49 }
 0x1fd   : > { %v368_v52 = vmul.f32 %v367_v51, %v169_v8  ;;  %v369_v53 = vmul.f32 %v367_v51, %v170_v9  ;;  %v370_v54 = vmul.f32 %v367_v51, %v171_v10  ;;  %v371_v55 = vmul.f32 %v367_v51, %v172_v11 }
 0x1fe   : > { %v372_v56 = vmul.f32 %v367_v51, %v173_v15  ;;  %v373_v57 = vmul.f32 %v367_v51, %v174_v18  ;;  %v374_v58 = vmul.f32 %v367_v51, %v175_v21  ;;  %v375_v59 = vmul.f32 %v367_v51, %v176_v24 }
 0x1ff   : > { %376 = vst.msk [vmem:[%s163_s24] sm:$0xff] %vm177_vm1, %v368_v52  ;;  %377 = vst.msk [vmem:[%s163_s24 + $0x8] sm:$0xff] %vm177_vm1, %v369_v53 }
 0x200   : > { %378 = vst.msk [vmem:[%s163_s24 + $0x10] sm:$0xff] %vm177_vm1, %v370_v54  ;;  %379 = vst.msk [vmem:[%s163_s24 + $0x18] sm:$0xff] %vm177_vm1, %v371_v55 }
 0x201   : > { %380 = vst.msk [vmem:[%s163_s24 + $0x20] sm:$0xff] %vm177_vm1, %v372_v56  ;;  %381 = vst.msk [vmem:[%s163_s24 + $0x28] sm:$0xff] %vm177_vm1, %v373_v57 }
 0x202   : > { %382 = vst.msk [vmem:[%s163_s24 + $0x30] sm:$0xff] %vm177_vm1, %v374_v58  ;;  %383 = vst.msk [vmem:[%s163_s24 + $0x38] sm:$0xff] %vm177_vm1, %v375_v59 }
 0x203   : > { %568 = shalt.err (!%p565_p3)
}
 0x204   : > { %s569_s6 = scalar_lea.hbm %s727_s28, 1024  ;;  %s573_s9 = scalar_lea.hbm %s783_s3, 2048 }
 0x205   : > { %p570_p4 = scmp.ne.s32.totalorder %s727_s28, %s569_s6  ;;  %p574_p9 = scmp.lt.u32.totalorder %s727_s28, %s783_s3 }
 0x206   : > { %p575_p10 = scmp.lt.u32.totalorder %s573_s9, %s569_s6  ;;  %p577_p12 = scmp.lt.u32.totalorder %s569_s6, %s727_s28 }
 0x207   : > { %p571_p7 = pnand %p570_p4, %p683_p5 }
 0x208   : > { %p576_p11 = por %p575_p10, %p574_p9 }
 0x209   : > { %p572_p8 = pneg %p571_p7 }
 0x20a   : > { %p578_p13 = por %p577_p12, %p576_p11 }
 0x20c   : > { %p579_p0 = pnand %p578_p13, %p572_p8 }
 0x20e   : > { %582 = shalt.err (!%p579_p0)
}
 0x20f   : > { %s623_s17 = smov 128   ;;  %s624_s19 = smov 8  }
 0x210   : > { %507 = dma.vmem_to_hbm [thread:$0]  (%p683_p5), %s729_s25, 1024, %s727_s28, %s739_s16, %s623_s17, %s623_s17, %s624_s19  }
 0x211 PF: > { %p513_p1 = scmp.ge.s32.totalorder %s617_s15, 2  ;;  %s413_s20 = sand.u32 1, %s605_s12  }
 0x212   : > { %s414_s24 = scalar_lea.sflag [#allocation3], %s413_s20 }
 0x213   : > { %p510_p2 = pnand %p513_p1, %p687_p6 }
 0x215   : > { %600 = dma.done.wait (!%p510_p2), %s414_s24, 1024  }
 0x216   : > { %602 = vsyncadd (!%p510_p2), %s414_s24, 4294966272  ;;  %p13_p3 = scmp.ge.s32.totalorder %s670_s18, 4   ;;  %s786_s12 = smov %s609_s13 }
 0x217   : > { %s787_s13 = smov %s613_s14  ;;  %s788_s14 = smov %s681_s21 }
 0x218   : > { %s789_s15 = smov %s670_s18  ;;  %15 = sbr.rel (!%p13_p3) target bundleno = 3 (0x3), region = 67 }
 0x21f   :  { %419 = vsyncpa [#allocation3], 1 }
 0x220   :  { %421 = vsyncpa [#allocation3 + $0x1], 1 }

// kernel: context_guided_block_down.4
= control target key start
LH: loop header
LB: loop body
LE: loop exit
PB: predicated region body
PF: predicated region fallthrough
CT: control target
= control target key end

     0   :  { %vm356_vm0 = vcmask 261120   ;;  %s3186_s2 = inlined_call_operand.vmem [shape: bf16[288,32], index: 2, kind: input, shape index: {}]   ;;  %s3187_s0 = inlined_call_operand.vmem [shape: bf16[128,288], index: 0, kind: input, shape index: {}]   ;;  %s3188_s3 = inlined_call_operand.vmem [shape: bf16[288,32], index: 3, kind: input, shape index: {}]   ;;  %s3189_s1 = inlined_call_operand.vmem [shape: bf16[128,288], index: 1, kind: input, shape index: {}]   ;;  %s3190_s14 = inlined_call_operand.vmem [shape: bf16[32,32], index: 14, kind: input, shape index: {}]   ;;  %s3191_s13 = inlined_call_operand.vmem [shape: bf16[32,32], index: 13, kind: input, shape index: {}]   ;;  %s3192_s4 = inlined_call_operand.vmem [shape: f32[1,32], index: 4, kind: input, shape index: {}]   ;;  %s3193_s5 = inlined_call_operand.vmem [shape: f32[1,32], index: 5, kind: input, shape index: {}]   ;;  %s3194_s6 = inlined_call_operand.vmem [shape: f32[1,32], index: 6, kind: input, shape index: {}]   ;;  %s3195_s7 = inlined_call_operand.vmem [shape: f32[1,32], index: 7, kind: input, shape index: {}]   ;;  %s3196_s8 = inlined_call_operand.vmem [shape: f32[1,32], index: 8, kind: input, shape index: {}]   ;;  %s3197_s9 = inlined_call_operand.vmem [shape: f32[1,32], index: 9, kind: input, shape index: {}]   ;;  %s3198_s10 = inlined_call_operand.vmem [shape: f32[1,32], index: 10, kind: input, shape index: {}]   ;;  %s3199_s11 = inlined_call_operand.vmem [shape: f32[1,32], index: 11, kind: input, shape index: {}]   ;;  %s3200_s12 = inlined_call_operand.vmem [shape: f32[1,32], index: 12, kind: input, shape index: {}]   ;;  %s3201_s15 = inlined_call_operand.vmem [shape: f32[1,32], index: 15, kind: input, shape index: {}]   ;;  %s3202_s16 = inlined_call_operand.vmem [shape: f32[1,32], index: 16, kind: input, shape index: {}]   ;;  %s3203_s17 = inlined_call_operand.vmem [shape: f32[1,32], index: 17, kind: input, shape index: {}]   ;;  %s3204_s18 = inlined_call_operand.vmem [shape: f32[128,32], index: 18, kind: output, shape index: {}]  }
   0x1   :  { %3208 = sst [smem:[#allocation2_spill]] %s3186_s2  ;;  %v2283_v49 = vld [vmem:[%s3189_s1 + $0x34] ss:$12 sps:$4 sm:$0xff]   ;;  %v2281_v52 = vld [vmem:[%s3189_s1 + $0x30] ss:$12 sps:$4 sm:$0xff]  }
   0x2   :  { %3209 = sst [smem:[#allocation3_spill]] %s3187_s0  ;;  %s3211_s29 = sld [smem:[#allocation2_spill]]  ;;  %v2288_v53 = vld [vmem:[%s3189_s1 + $0x4c] ss:$12 sps:$4 sm:$0xff]   ;;  %v2290_v57 = vld [vmem:[%s3189_s1 + $0x48] ss:$12 sps:$4 sm:$0xff]  }
   0x3   :  { %3210 = sst [smem:[#allocation4_spill]] %s3188_s3  ;;  %s3212_s19 = sld [smem:[#allocation3_spill]]  ;;  %v2295_v58 = vld [vmem:[%s3189_s1 + $0x64] ss:$12 sps:$4 sm:$0xff]   ;;  %v2297_v61 = vld [vmem:[%s3189_s1 + $0x60] ss:$12 sps:$4 sm:$0xff]  }
   0x4   :  { %s3213_s21 = sld [smem:[#allocation4_spill]]  ;;  %v2300_v62 = vld [vmem:[%s3189_s1 + $0x7c] ss:$12 sps:$4 sm:$0xff]  }
   0x8   :  { %v2215_v0 = vld [vmem:[%s3211_s29 + $0x40] sm:$0xff]   ;;  %v2217_v2 = vld [vmem:[%s3211_s29 + $0x48] sm:$0xff]   ;;  %v2219_v4 = vld [vmem:[%s3211_s29 + $0x50] sm:$0xff]  }
   0x9   :  { %v2216_v1 = vld [vmem:[%s3211_s29] sm:$0xff]   ;;  %1935 = vmatprep.subr.bf16.mxu0 %v2215_v0  ;;  %v2218_v3 = vld [vmem:[%s3211_s29 + $0x8] sm:$0xff]   ;;  %v2220_v5 = vld [vmem:[%s3211_s29 + $0x10] sm:$0xff]  }
   0xa   :  { %1936 = vmatpush3.bf16.msra.mxu0 %v2216_v1  ;;  %v2221_v6 = vld [vmem:[%s3211_s29 + $0x58] sm:$0xff]   ;;  %v2223_v8 = vld [vmem:[%s3211_s29 + $0x60] sm:$0xff]   ;;  %v2225_v11 = vld [vmem:[%s3211_s29 + $0x68] sm:$0xff]  }
   0xb   :  { %1937 = vmatprep.subr.bf16.mxu0 %v2217_v2  ;;  %v2222_v7 = vld [vmem:[%s3211_s29 + $0x18] sm:$0xff]   ;;  %v2229_v9 = vld [vmem:[%s3211_s29 + $0x80] sm:$0xff]   ;;  %v2226_v12 = vld [vmem:[%s3211_s29 + $0x28] sm:$0xff]  }
   0xc   :  { %v2224_v10 = vld [vmem:[%s3211_s29 + $0x20] sm:$0xff]   ;;  %2103 = vmatprep.subr.bf16.mxu1 %v2229_v9  ;;  %v2232_v13 = vld [vmem:[%s3211_s29 + $0x88] sm:$0xff]   ;;  %v2227_v14 = vld [vmem:[%s3211_s29 + $0x70] sm:$0xff]  }
   0xd   :  { %2104 = vmatpush3.bf16.msra.mxu1 %v2229_v9  ;;  %v2235_v15 = vld [vmem:[%s3212_s19 + $0x4] ss:$12 sps:$4 sm:$0xff]   ;;  %v2237_v18 = vld [vmem:[%s3212_s19 + $0x8] ss:$12 sps:$4 sm:$0xff]   ;;  %v2239_v20 = vld [vmem:[%s3212_s19 + $0x20] ss:$12 sps:$4 sm:$0xff]  }
   0xe   :  { %1938 = vmatpush3.bf16.msra.mxu0 %v2218_v3  ;;  %2105 = vmatprep.subr.bf16.mxu1 %v2232_v13  ;;  %v2236_v16 = vld [vmem:[%s3213_s21 + $0x40] sm:$0xff]   ;;  %v2228_v17 = vld [vmem:[%s3211_s29 + $0x30] sm:$0xff]   ;;  %v2230_v21 = vld [vmem:[%s3211_s29 + $0x78] sm:$0xff]  }
   0xf   :  { %1939 = vmatprep.subr.bf16.mxu0 %v2219_v4  ;;  %413 = vmatprep.mubr.bf16.mxu0 %v2235_v15  ;;  %v2238_v19 = vld [vmem:[%s3213_s21] sm:$0xff]   ;;  %v2243_v22 = vld [vmem:[%s3213_s21 + $0x48] sm:$0xff]   ;;  %v2231_v24 = vld [vmem:[%s3211_s29 + $0x38] sm:$0xff]  }
  0x10   :  { %2107 = vmatprep.mubr.msk.bf16.mxu1 %vm356_vm0, %v2237_v18  ;;  %v2244_v23 = vld [vmem:[%s3213_s21 + $0x8] sm:$0xff]   ;;  %v2248_v26 = vld [vmem:[%s3213_s21 + $0x50] sm:$0xff]   ;;  %v2249_v28 = vld [vmem:[%s3212_s19 + $0x38] ss:$12 sps:$4 sm:$0xff]  }
  0x11   :  { %2106 = vmatpush3.bf16.msra.mxu1 %v2232_v13  ;;  %v2233_v25 = vld [vmem:[%s3212_s19] ss:$12 sps:$4 sm:$0xff]   ;;  %v2240_v27 = vld [vmem:[%s3212_s19 + $0x1c] ss:$12 sps:$4 sm:$0xff]   ;;  %v2250_v29 = vld [vmem:[%s3213_s21 + $0x10] sm:$0xff]  }
  0x12   :  { %1940 = vmatpush3.bf16.msra.mxu0 %v2220_v5  ;;  %2183 = vmatprep.subr.bf16.mxu1 %v2236_v16  ;;  %v2251_v30 = vld [vmem:[%s3212_s19 + $0x50] ss:$12 sps:$4 sm:$0xff]   ;;  %v2242_v33 = vld [vmem:[%s3212_s19 + $0x18] ss:$12 sps:$4 sm:$0xff]   ;;  %v2245_v34 = vld [vmem:[%s3212_s19 + $0x34] ss:$12 sps:$4 sm:$0xff]  }
  0x13   :  { %1941 = vmatprep.subr.bf16.mxu0 %v2221_v6  ;;  %v2255_v31 = vld [vmem:[%s3213_s21 + $0x58] sm:$0xff]   ;;  %v2260_v35 = vld [vmem:[%s3213_s21 + $0x60] sm:$0xff]   ;;  %v2261_v36 = vld [vmem:[%s3212_s19 + $0x68] ss:$12 sps:$4 sm:$0xff]  }
  0x14   :  { %2108 = vmatmul.mubr.msk.bf16.vlgmr.msra.gmra.mrb[0].mxu1 %vm356_vm0, %v2239_v20  ;;  %v2256_v32 = vld [vmem:[%s3213_s21 + $0x18] sm:$0xff]   ;;  %v2262_v37 = vld [vmem:[%s3213_s21 + $0x20] sm:$0xff]   ;;  %v2267_v39 = vld [vmem:[%s3213_s21 + $0x68] sm:$0xff]  }
  0x15   :  { %2191 = vmatpush3.bf16.msra.mxu1 %v2238_v19  ;;  %2111 = vmatprep.mubr.msk.bf16.mxu1 %vm356_vm0, %v2249_v28  ;;  %v2263_v38 = vld [vmem:[%s3212_s19 + $0x80] ss:$12 sps:$4 sm:$0xff]   ;;  %v2247_v40 = vld [vmem:[%s3212_s19 + $0x30] ss:$12 sps:$4 sm:$0xff]   ;;  %v2273_v44 = vld [vmem:[%s3212_s19 + $0x98] ss:$12 sps:$4 sm:$0xff]  }
  0x16   :  { %1942 = vmatpush3.bf16.msra.mxu0 %v2222_v7  ;;  %2184 = vmatprep.subr.bf16.mxu1 %v2243_v22  ;;  %v2268_v41 = vld [vmem:[%s3213_s21 + $0x28] sm:$0xff]   ;;  %v2272_v43 = vld [vmem:[%s3213_s21 + $0x70] sm:$0xff]   ;;  %v2279_v47 = vld [vmem:[%s3213_s21 + $0x78] sm:$0xff]  }
  0x17   :  { %1943 = vmatprep.subr.bf16.mxu0 %v2223_v8  ;;  %v2252_v42 = vld [vmem:[%s3212_s19 + $0x4c] ss:$12 sps:$4 sm:$0xff]   ;;  %v2274_v45 = vld [vmem:[%s3213_s21 + $0x30] sm:$0xff]   ;;  %v2287_v54 = vld [vmem:[%s3213_s21 + $0x80] sm:$0xff]  }
  0x18   :  { %v2275_v46 = vld [vmem:[%s3212_s19 + $0xb0] ss:$12 sps:$4 sm:$0xff]   ;;  %v2254_v50 = vld [vmem:[%s3212_s19 + $0x48] ss:$12 sps:$4 sm:$0xff]   ;;  %v2259_v55 = vld [vmem:[%s3212_s19 + $0x60] ss:$12 sps:$4 sm:$0xff]  }
  0x19   :  { %2192 = vmatpush3.bf16.msra.mxu1 %v2244_v23  ;;  %v2280_v48 = vld [vmem:[%s3213_s21 + $0x38] sm:$0xff]   ;;  %v2257_v51 = vld [vmem:[%s3212_s19 + $0x64] ss:$12 sps:$4 sm:$0xff]   ;;  %v2269_v60 = vld [vmem:[%s3212_s19 + $0x94] ss:$12 sps:$4 sm:$0xff]  }
  0x1a   :  { %1944 = vmatpush3.bf16.msra.mxu0 %v2224_v10  ;;  %2185 = vmatprep.subr.bf16.mxu1 %v2248_v26  ;;  %v2264_v56 = vld [vmem:[%s3212_s19 + $0x7c] ss:$12 sps:$4 sm:$0xff]   ;;  %v2266_v59 = vld [vmem:[%s3212_s19 + $0x78] ss:$12 sps:$4 sm:$0xff]   ;;  %v2305_v2 = vld [vmem:[%s3189_s1 + $0x94] ss:$12 sps:$4 sm:$0xff]  }
  0x1b   :  { %1945 = vmatprep.subr.bf16.mxu0 %v2225_v11  ;;  %v2271_v63 = vld [vmem:[%s3212_s19 + $0x90] ss:$12 sps:$4 sm:$0xff]   ;;  %v2276_v0 = vld [vmem:[%s3212_s19 + $0xac] ss:$12 sps:$4 sm:$0xff]   ;;  %v2278_v3 = vld [vmem:[%s3212_s19 + $0xa8] ss:$12 sps:$4 sm:$0xff]  }
  0x1c   :  { %2112 = vmatmul.mubr.msk.bf16.gmra.mrb[4].mxu1 %vm356_vm0, %v2251_v30  ;;  %v2302_v1 = vld [vmem:[%s3189_s1 + $0x78] ss:$12 sps:$4 sm:$0xff]   ;;  %v2307_v5 = vld [vmem:[%s3189_s1 + $0x90] ss:$12 sps:$4 sm:$0xff]   ;;  %v2284_v7 = vld [vmem:[%s3189_s1] ss:$12 sps:$4 sm:$0xff]  }
  0x1d   :  { %2193 = vmatpush3.bf16.msra.mxu1 %v2250_v29  ;;  %2115 = vmatprep.mubr.msk.bf16.mxu1 %vm356_vm0, %v2261_v36  ;;  %v2286_v4 = vld [vmem:[%s3189_s1 + $0x4] ss:$12 sps:$4 sm:$0xff]   ;;  %v2310_v6 = vld [vmem:[%s3189_s1 + $0xac] ss:$12 sps:$4 sm:$0xff]   ;;  %v2291_v8 = vld [vmem:[%s3189_s1 + $0x1c] ss:$12 sps:$4 sm:$0xff]  }
  0x1e   :  { %1946 = vmatpush3.bf16.msra.mxu0 %v2226_v12  ;;  %2186 = vmatprep.subr.bf16.mxu1 %v2255_v31  ;;  %v2294_v9 = vld [vmem:[%s3213_s21 + $0x88] sm:$0xff]   ;;  %v2293_v11 = vld [vmem:[%s3189_s1 + $0x18] ss:$12 sps:$4 sm:$0xff]   ;;  %v2304_v15 = vld [vmem:[%s3189_s1 + $0x50] ss:$12 sps:$4 sm:$0xff]  }
  0x1f   :  { %1947 = vmatprep.subr.bf16.mxu0 %v2227_v14  ;;  %v2312_v10 = vld [vmem:[%s3189_s1 + $0xa8] ss:$12 sps:$4 sm:$0xff]   ;;  %v2299_v13 = vld [vmem:[%s3189_s1 + $0x20] ss:$12 sps:$4 sm:$0xff]   ;;  %v2303_v14 = vld [vmem:[%s3189_s1 + $0x38] ss:$12 sps:$4 sm:$0xff]  }
  0x20   :  { %v2298_v12 = vld [vmem:[%s3189_s1 + $0x8] ss:$12 sps:$4 sm:$0xff]   ;;  %v2313_v18 = vld [vmem:[%s3189_s1 + $0x98] ss:$12 sps:$4 sm:$0xff]   ;;  %v2705_v36 = vld [vmem:[%s3192_s4] ss:$0 sm:$0xff] }
  0x21   :  { %2194 = vmatpush3.bf16.msra.mxu1 %v2256_v32  ;;  %v2315_v20 = vld [vmem:[%s3190_s14] sm:$0xff]  }
  0x22   :  { %1948 = vmatpush3.bf16.msra.mxu0 %v2228_v17  ;;  %2187 = vmatprep.subr.bf16.mxu1 %v2260_v35  ;;  %v2309_v17 = vld [vmem:[%s3189_s1 + $0x80] ss:$12 sps:$4 sm:$0xff]  }
  0x23   :  { %1949 = vmatprep.subr.bf16.mxu0 %v2230_v21  ;;  %v2316_v21 = vld [vmem:[%s3190_s14 + $0x8] sm:$0xff]  }
  0x24   :  { %2116 = vmatmul.mubr.msk.bf16.gmra.mrb[8].mxu1 %vm356_vm0, %v2263_v38 }
  0x25   :  { %2195 = vmatpush3.bf16.msra.mxu1 %v2262_v37  ;;  %2119 = vmatprep.mubr.msk.bf16.mxu1 %vm356_vm0, %v2273_v44 }
  0x26   :  { %1950 = vmatpush3.bf16.msra.mxu0 %v2231_v24  ;;  %2188 = vmatprep.subr.bf16.mxu1 %v2267_v39 }
  0x27   :  { %2009 = vmatprep.subr.bf16.mxu0 %v2236_v16  ;;  %v2308_v16 = vld [vmem:[%s3189_s1 + $0x68] ss:$12 sps:$4 sm:$0xff]  }
  0x29   :  { %414 = vmatmul.mubr.bf16.vlgmr.msra.gmra.mrb[0].mxu0 %v2233_v25  ;;  %2196 = vmatpush3.bf16.msra.mxu1 %v2268_v41 }
  0x2a   :  { %2010 = vmatpush3.bf16.msra.mxu0 %v2238_v19  ;;  %421 = vmatprep.mubr.bf16.mxu0 %v2240_v27  ;;  %v2314_v19 = vld [vmem:[%s3189_s1 + $0xb0] ss:$12 sps:$4 sm:$0xff]  }
  0x2b   :  { %2011 = vmatprep.subr.bf16.mxu0 %v2243_v22  ;;  %2189 = vmatprep.subr.bf16.mxu1 %v2272_v43  ;;  %v2691_v22 = vld [vmem:[%s3191_s13] sm:$0xff]  }
  0x2c   :  { %2120 = vmatmul.mubr.msk.bf16.gmra.mrb[12].mxu1 %vm356_vm0, %v2275_v46 }
  0x2d   :  { %2197 = vmatpush3.bf16.msra.mxu1 %v2274_v45  ;;  %1044 = vmatprep.mubr.bf16.mxu1 %v2283_v49 }
  0x2e   :  { %2012 = vmatpush3.bf16.msra.mxu0 %v2244_v23  ;;  %2190 = vmatprep.subr.bf16.mxu1 %v2279_v47 }
  0x2f   :  { %2013 = vmatprep.subr.bf16.mxu0 %v2248_v26 }
  0x31   :  { %422 = vmatmul.mubr.bf16.gmra.mrb[4].mxu0 %v2242_v33  ;;  %2198 = vmatpush3.bf16.msra.mxu1 %v2280_v48 }
  0x32   :  { %429 = vmatprep.mubr.bf16.mxu0 %v2245_v34  ;;  %2014 = vmatpush3.bf16.msra.mxu0 %v2250_v29 }
  0x33   :  { %2015 = vmatprep.subr.bf16.mxu0 %v2255_v31  ;;  %2143 = vmatprep.subr.bf16.mxu1 %v2315_v20 }
  0x34   :  { %1045 = vmatmul.mubr.bf16.vlgmr.msra.gmra.mrb[16].mxu1 %v2281_v52 }
  0x35   :  { %1052 = vmatprep.mubr.bf16.mxu1 %v2288_v53  ;;  %2144 = vmatpush3.bf16.msra.mxu1 %v2315_v20 }
  0x36   :  { %2016 = vmatpush3.bf16.msra.mxu0 %v2256_v32  ;;  %2145 = vmatprep.subr.bf16.mxu1 %v2316_v21 }
  0x37   :  { %2017 = vmatprep.subr.bf16.mxu0 %v2260_v35 }
  0x39   :  { %430 = vmatmul.mubr.bf16.gmra.mrb[8].mxu0 %v2247_v40  ;;  %2146 = vmatpush3.bf16.msra.mxu1 %v2316_v21 }
  0x3a   :  { %437 = vmatprep.mubr.bf16.mxu0 %v2252_v42  ;;  %2018 = vmatpush3.bf16.msra.mxu0 %v2262_v37  ;;  %v2716_v42 = vld [vmem:[%s3194_s6] ss:$0 sm:$0xff] }
  0x3b   :  { %2019 = vmatprep.subr.bf16.mxu0 %v2267_v39  ;;  %2163 = vmatprep.subr.bf16.mxu1 %v2691_v22  ;;  %v2710_v39 = vld [vmem:[%s3193_s5] ss:$0 sm:$0xff] }
  0x3c   :  { %1053 = vmatmul.mubr.bf16.gmra.mrb[20].mxu1 %v2290_v57 }
  0x3d   :  { %1060 = vmatprep.mubr.bf16.mxu1 %v2295_v58  ;;  %v2738_v58 = vld [vmem:[%s3196_s8] ss:$0 sm:$0xff] }
  0x3e   :  { %2020 = vmatpush3.bf16.msra.mxu0 %v2268_v41 }
  0x3f   :  { %2021 = vmatprep.subr.bf16.mxu0 %v2272_v43 }
  0x41   :  { %438 = vmatmul.mubr.bf16.gmra.mrb[12].mxu0 %v2254_v50  ;;  %v2728_v50 = vld [vmem:[%s3195_s7] ss:$0 sm:$0xff] }
  0x42   :  { %445 = vmatprep.mubr.bf16.mxu0 %v2257_v51  ;;  %2022 = vmatpush3.bf16.msra.mxu0 %v2274_v45 }
  0x43   :  { %2023 = vmatprep.subr.bf16.mxu0 %v2279_v47 }
  0x44   :  { %1061 = vmatmul.mubr.bf16.gmra.mrb[24].mxu1 %v2297_v61 }
  0x45   :  { %1068 = vmatprep.mubr.bf16.mxu1 %v2300_v62 }
  0x46   :  { %2024 = vmatpush3.bf16.msra.mxu0 %v2280_v48 }
  0x47   :  { %2123 = vmatprep.subr.bf16.mxu0 %v2287_v54 }
  0x49   :  { %446 = vmatmul.mubr.bf16.gmra.mrb[16].mxu0 %v2259_v55 }
  0x4a   :  { %453 = vmatprep.mubr.bf16.mxu0 %v2264_v56 }
  0x4c   :  { %1069 = vmatmul.mubr.bf16.gmra.mrb[28].mxu1 %v2302_v1  ;;  %v2746_v1 = vld [vmem:[%s3197_s9] ss:$0 sm:$0xff] }
  0x4d   :  { %1076 = vmatprep.mubr.bf16.mxu1 %v2305_v2 }
  0x51   :  { %454 = vmatmul.mubr.bf16.gmra.mrb[20].mxu0 %v2266_v59 }
  0x52   :  { %461 = vmatprep.mubr.bf16.mxu0 %v2269_v60 }
  0x54   :  { %1077 = vmatmul.mubr.bf16.gmra.mrb[32].mxu1 %v2307_v5 }
  0x55   :  { %1084 = vmatprep.mubr.bf16.mxu1 %v2310_v6 }
  0x59   :  { %462 = vmatmul.mubr.bf16.gmra.mrb[24].mxu0 %v2271_v63 }
  0x5a   :  { %469 = vmatprep.mubr.bf16.mxu0 %v2276_v0 }
  0x5c   :  { %1085 = vmatmul.mubr.bf16.gmra.mrb[36].mxu1 %v2312_v10 }
  0x61   :  { %470 = vmatmul.mubr.bf16.gmra.mrb[28].mxu0 %v2278_v3 }
  0x62   :  { %1028 = vmatprep.mubr.bf16.mxu0 %v2286_v4 }
  0x69   :  { %1029 = vmatmul.mubr.bf16.vlgmr.msra.gmra.mrb[32].mxu0 %v2284_v7 }
  0x6a   :  { %2124 = vmatpush3.bf16.msra.mxu0 %v2287_v54  ;;  %1036 = vmatprep.mubr.bf16.mxu0 %v2291_v8 }
  0x6b   :  { %2125 = vmatprep.subr.bf16.mxu0 %v2294_v9 }
  0x6e   :  { %2126 = vmatpush3.bf16.msra.mxu0 %v2294_v9 }
  0x71   :  { %1037 = vmatmul.mubr.bf16.gmra.mrb[36].mxu0 %v2293_v11 }
  0x72   :  { %2127 = vmatprep.mubr.msk.bf16.mxu0 %vm356_vm0, %v2298_v12 }
  0x79   :  { %2128 = vmatmul.mubr.msk.bf16.vlgmr.msra.gmra.mrb[40].mxu0 %vm356_vm0, %v2299_v13 }
  0x7a   :  { %2131 = vmatprep.mubr.msk.bf16.mxu0 %vm356_vm0, %v2303_v14 }
  0x81   :  { %2132 = vmatmul.mubr.msk.bf16.gmra.mrb[44].mxu0 %vm356_vm0, %v2304_v15 }
  0x82   :  { %2135 = vmatprep.mubr.msk.bf16.mxu0 %vm356_vm0, %v2308_v16 }
  0x89   :  { %2136 = vmatmul.mubr.msk.bf16.gmra.mrb[48].mxu0 %vm356_vm0, %v2309_v17 }
  0x8a   :  { %2139 = vmatprep.mubr.msk.bf16.mxu0 %vm356_vm0, %v2313_v18 }
  0x91   :  { %2140 = vmatmul.mubr.msk.bf16.gmra.mrb[52].mxu0 %vm356_vm0, %v2314_v19 }
  0xe7   :  { %v2109_v23 = vpop.f32.mrb[0].mxu1 }
  0xe8   :  { %v512_v24 = vpop.f32.mrb[1].mxu1 }
  0xe9   :  { %v2110_v25 = vpop.f32.mrb[2].mxu1 }
  0xea   :  { %v515_v26 = vpop.f32.mrb[3].mxu1 }
  0xef   :  { %v2694_v27 = vpop.f32.mrb[4].mxu1 }
  0xf0   :  { %v2696_v29 = vpop.f32.mrb[5].mxu1 }
  0xf1   :  { %v2698_v31 = vpop.f32.mrb[6].mxu1 }
  0xf2   :  { %v2700_v34 = vpop.f32.mrb[7].mxu1 }
  0xf7   :  { %v2720_v46 = vpop.f32.mrb[8].mxu1 }
  0xf8   :  { %v2722_v48 = vpop.f32.mrb[9].mxu1 }
  0xf9   :  { %v2731_v54 = vpop.f32.mrb[10].mxu1 }
  0xfa   :  { %v2733_v56 = vpop.f32.mrb[11].mxu1 }
  0xfc   :  { %v1951_v28 = vpop.f32.mrb[0].mxu0 }
  0xfd   :  { %v1952_v30 = vpop.f32.mrb[1].mxu0 }
  0xfe   :  { %v1953_v32 = vadd.f32 %v1952_v30, %v1951_v28  ;;  %v1954_v33 = vpop.f32.mrb[2].mxu0 }
  0xff   :  { %v1955_v35 = vpop.f32.mrb[3].mxu0  ;;  %v2755_v14 = vpop.f32.mrb[12].mxu1 }
 0x100   :  { %v1956_v37 = vadd.f32 %v1955_v35, %v1954_v33  ;;  %v513_v38 = vadd.f32 %v1953_v32, %v512_v24  ;;  %v2758_v17 = vpop.f32.mrb[13].mxu1 }
 0x102   :  { %v582_v40 = vmul.f32 %v2705_v36, %v513_v38  ;;  %v516_v41 = vadd.f32 %v1956_v37, %v515_v26 }
 0x104   :  { %v605_v43 = vadd.f32 %v2710_v39, %v582_v40  ;;  %v583_v44 = vmul.f32 %v2705_v36, %v516_v41  ;;  %v1957_v45 = vpop.f32.mrb[4].mxu0 }
 0x105   :  { %v1958_v47 = vpop.f32.mrb[5].mxu0 }
 0x106   :  { %vm621_vm1 = vcmp.ge.f32.partialorder %v605_v43, 0.0  ;;  %v644_v49 = vmul.f32 %v2716_v42, %v605_v43  ;;  %v606_v51 = vadd.f32 %v2710_v39, %v583_v44  ;;  %v1959_v52 = vadd.f32 %v1958_v47, %v1957_v45  ;;  %v1960_v53 = vpop.f32.mrb[6].mxu0 }
 0x107   :  { %v1961_v55 = vpop.f32.mrb[7].mxu0 }
 0x108   :  { %v660_v57 = vsel %vm621_vm1, %v605_v43, %v644_v49  ;;  %vm622_vm2 = vcmp.ge.f32.partialorder %v606_v51, 0.0  ;;  %v645_v59 = vmul.f32 %v2716_v42, %v606_v51  ;;  %v521_v60 = vadd.f32 %v2109_v23, %v1959_v52  ;;  %v2762_v23 = vpop.f32.mrb[14].mxu1 }
 0x109   :  { %v1197_v61 = vmul.f32 %v2728_v50, %v660_v57  ;;  %v1962_v62 = vadd.f32 %v1961_v55, %v1960_v53  ;;  %v2769_v28 = vpop.f32.mrb[15].mxu1 }
 0x10a   :  { %v661_v63 = vsel %vm622_vm2, %v606_v51, %v645_v59  ;;  %v584_v0 = vmul.f32 %v2705_v36, %v521_v60  ;;  %v2037_v52 = vpop.f32.mrb[16].mxu1 }
 0x10b   :  { %v1220_v2 = vadd.f32 %v2738_v58, %v1197_v61  ;;  %v1198_v3 = vmul.f32 %v2728_v50, %v661_v63  ;;  %v524_v4 = vadd.f32 %v2110_v25, %v1962_v62  ;;  %v2038_v57 = vpop.f32.mrb[17].mxu1 }
 0x10c   :  { %v607_v5 = vadd.f32 %v2710_v39, %v584_v0  ;;  %v1963_v6 = vpop.f32.mrb[8].mxu0  ;;  %v2040_v61 = vpop.f32.mrb[18].mxu1 }
 0x10d   :  { %v1221_v7 = vadd.f32 %v2738_v58, %v1198_v3  ;;  %v585_v8 = vmul.f32 %v2705_v36, %v524_v4  ;;  %v1964_v9 = vpop.f32.mrb[9].mxu0  ;;  %vm1236_vm3 = vcmp.ge.f32.partialorder %v1220_v2, 0.0  ;;  %v1259_v10 = vmul.f32 %v2746_v1, %v1220_v2  ;;  %v2041_v3 = vpop.f32.mrb[19].mxu1 }
 0x10e   :  { %vm623_vm4 = vcmp.ge.f32.partialorder %v607_v5, 0.0  ;;  %v646_v11 = vmul.f32 %v2716_v42, %v607_v5  ;;  %v1965_v12 = vadd.f32 %v1964_v9, %v1963_v6  ;;  %v1966_v13 = vpop.f32.mrb[10].mxu0  ;;  %v2789_v4 = vadd.f32 %v2038_v57, %v2037_v52 }
 0x10f   :  { %v608_v15 = vadd.f32 %v2710_v39, %v585_v8  ;;  %v1967_v16 = vpop.f32.mrb[11].mxu0  ;;  %vm1237_vm5 = vcmp.ge.f32.partialorder %v1221_v7, 0.0  ;;  %v1260_v18 = vmul.f32 %v2746_v1, %v1221_v7  ;;  %v2765_v24 = vsel %vm1236_vm3, %v1220_v2, %v1259_v10 }
 0x110   :  { %v662_v19 = vsel %vm623_vm4, %v607_v5, %v646_v11  ;;  %v1968_v20 = vadd.f32 %v1967_v16, %v1966_v13  ;;  %v529_v21 = vadd.f32 %v1965_v12, %v2696_v29  ;;  %v2791_v5 = vadd.f32 %v2041_v3, %v2040_v61 }
 0x111   :  { %v1199_v25 = vmul.f32 %v2728_v50, %v662_v19  ;;  %vm624_vm6 = vcmp.ge.f32.partialorder %v608_v15, 0.0  ;;  %v647_v26 = vmul.f32 %v2716_v42, %v608_v15  ;;  %v2771_v30 = vsel %vm1237_vm5, %v1221_v7, %v1260_v18 }
 0x112   :  { %v586_v32 = vmul.f32 %v2705_v36, %v529_v21  ;;  %v532_v33 = vadd.f32 %v1968_v20, %v2700_v34  ;;  %v1392_v29 = vpack.c.bf16 %v2771_v30, %v2765_v24  ;;  %v3062_v24 = vld [vmem:[%s3201_s15] ss:$0 sm:$0xff] }
 0x113   :  { %v1222_v35 = vadd.f32 %v2738_v58, %v1199_v25  ;;  %v663_v37 = vsel %vm624_vm6, %v608_v15, %v647_v26  ;;  %v2043_v25 = vpop.f32.mrb[20].mxu1 }
 0x114   :  { %v1200_v38 = vmul.f32 %v2728_v50, %v663_v37  ;;  %v609_v40 = vadd.f32 %v2710_v39, %v586_v32  ;;  %v587_v41 = vmul.f32 %v2705_v36, %v532_v33  ;;  %v1969_v43 = vpop.f32.mrb[12].mxu0  ;;  %v2044_v33 = vpop.f32.mrb[21].mxu1 }
 0x115   :  { %v1261_v44 = vmul.f32 %v2746_v1, %v1222_v35  ;;  %v1970_v45 = vpop.f32.mrb[13].mxu0  ;;  %vm1238_vm8 = vcmp.ge.f32.partialorder %v1222_v35, 0.0 }
 0x116   :  { %v1223_v47 = vadd.f32 %v2738_v58, %v1200_v38  ;;  %vm625_vm7 = vcmp.ge.f32.partialorder %v609_v40, 0.0  ;;  %v648_v34 = vmul.f32 %v2716_v42, %v609_v40  ;;  %v610_v49 = vadd.f32 %v2710_v39, %v587_v41  ;;  %v1972_v51 = vpop.f32.mrb[14].mxu0  ;;  %v2046_v41 = vpop.f32.mrb[22].mxu1 }
 0x117   :  { %v1971_v53 = vadd.f32 %v1970_v45, %v1969_v43  ;;  %v1973_v55 = vpop.f32.mrb[15].mxu0  ;;  %v2794_v6 = vsel %vm1238_vm8, %v1222_v35, %v1261_v44  ;;  %v2047_v45 = vpop.f32.mrb[23].mxu1 }
 0x118   :  { %vm1239_vm9 = vcmp.ge.f32.partialorder %v1223_v47, 0.0  ;;  %v1262_v59 = vmul.f32 %v2746_v1, %v1223_v47  ;;  %v664_v60 = vsel %vm625_vm7, %v609_v40, %v648_v34  ;;  %vm626_vm10 = vcmp.ge.f32.partialorder %v610_v49, 0.0 }
 0x119   :  { %v1201_v62 = vmul.f32 %v2728_v50, %v664_v60  ;;  %v649_v63 = vmul.f32 %v2716_v42, %v610_v49  ;;  %v537_v0 = vadd.f32 %v2694_v27, %v1971_v53  ;;  %v1974_v2 = vadd.f32 %v1973_v55, %v1972_v51 }
 0x11a   :  { %v2796_v7 = vsel %vm1239_vm9, %v1223_v47, %v1262_v59  ;;  %v2811_v40 = vadd.f32 %v2044_v33, %v2043_v25  ;;  %v2818_v52 = vadd.f32 %v2047_v45, %v2046_v41 }
 0x11b   :  { %v1224_v8 = vadd.f32 %v2738_v58, %v1201_v62  ;;  %v665_v9 = vsel %vm626_vm10, %v610_v49, %v649_v63  ;;  %v588_v10 = vmul.f32 %v2705_v36, %v537_v0  ;;  %v540_v11 = vadd.f32 %v2698_v31, %v1974_v2 }
 0x11c   :  { %v1202_v27 = vmul.f32 %v2728_v50, %v665_v9  ;;  %v1975_v12 = vpop.f32.mrb[16].mxu0  ;;  %v1393_v13 = vpack.c.bf16 %v2796_v7, %v2794_v6  ;;  %v2049_v9 = vpop.f32.mrb[24].mxu1 }
 0x11d   :  { %v611_v15 = vadd.f32 %v2710_v39, %v588_v10  ;;  %v589_v16 = vmul.f32 %v2705_v36, %v540_v11  ;;  %v1976_v18 = vpop.f32.mrb[17].mxu0  ;;  %vm1240_vm11 = vcmp.ge.f32.partialorder %v1224_v8, 0.0  ;;  %v1263_v35 = vmul.f32 %v2746_v1, %v1224_v8  ;;  %v2050_v11 = vpop.f32.mrb[25].mxu1 }
 0x11e   :  { %v1225_v19 = vadd.f32 %v2738_v58, %v1202_v27  ;;  %v1977_v20 = vadd.f32 %v1976_v18, %v1975_v12  ;;  %v1978_v21 = vpop.f32.mrb[18].mxu0  ;;  %v2838_v25 = vadd.f32 %v2050_v11, %v2049_v9 }
 0x11f   :  { %vm627_vm12 = vcmp.ge.f32.partialorder %v611_v15, 0.0  ;;  %v650_v31 = vmul.f32 %v2716_v42, %v611_v15  ;;  %v612_v26 = vadd.f32 %v2710_v39, %v589_v16  ;;  %v1979_v32 = vpop.f32.mrb[19].mxu0  ;;  %v2821_v53 = vsel %vm1240_vm11, %v1224_v8, %v1263_v35 }
 0x120   :  { %v1980_v37 = vadd.f32 %v1979_v32, %v1978_v21  ;;  %v545_v38 = vadd.f32 %v1977_v20, %v2722_v48  ;;  %vm1241_vm13 = vcmp.ge.f32.partialorder %v1225_v19, 0.0  ;;  %v1264_v47 = vmul.f32 %v2746_v1, %v1225_v19 }
 0x121   :  { %v666_v43 = vsel %vm627_vm12, %v611_v15, %v650_v31  ;;  %vm628_vm14 = vcmp.ge.f32.partialorder %v612_v26, 0.0  ;;  %v651_v44 = vmul.f32 %v2716_v42, %v612_v26 }
 0x122   :  { %v1203_v34 = vmul.f32 %v2728_v50, %v666_v43  ;;  %v590_v49 = vmul.f32 %v2705_v36, %v545_v38  ;;  %v548_v51 = vadd.f32 %v1980_v37, %v2733_v56  ;;  %v2823_v55 = vsel %vm1241_vm13, %v1225_v19, %v1264_v47  ;;  %v2052_v19 = vpop.f32.mrb[26].mxu1 }
 0x123   :  { %v667_v48 = vsel %vm628_vm14, %v612_v26, %v651_v44  ;;  %v1394_v62 = vpack.c.bf16 %v2823_v55, %v2821_v53  ;;  %v2053_v31 = vpop.f32.mrb[27].mxu1 }
 0x124   :  { %v1204_v57 = vmul.f32 %v2728_v50, %v667_v48  ;;  %v613_v59 = vadd.f32 %v2710_v39, %v590_v49  ;;  %v591_v60 = vmul.f32 %v2705_v36, %v548_v51  ;;  %v1981_v61 = vpop.f32.mrb[20].mxu0  ;;  %v1226_v56 = vadd.f32 %v2738_v58, %v1203_v34 }
 0x125   :  { %v1982_v63 = vpop.f32.mrb[21].mxu0  ;;  %v2841_v33 = vadd.f32 %v2053_v31, %v2052_v19 }
 0x126   :  { %vm629_vm15 = vcmp.ge.f32.partialorder %v613_v59, 0.0  ;;  %v652_v0 = vmul.f32 %v2716_v42, %v613_v59  ;;  %v614_v2 = vadd.f32 %v2710_v39, %v591_v60  ;;  %v1983_v3 = vadd.f32 %v1982_v63, %v1981_v61  ;;  %v1984_v8 = vpop.f32.mrb[22].mxu0 }
 0x127   :  { %v1985_v10 = vpop.f32.mrb[23].mxu0  ;;  %v1227_v27 = vadd.f32 %v2738_v58, %v1204_v57  ;;  %vm1242_vm1 = vcmp.ge.f32.partialorder %v1226_v56, 0.0  ;;  %v1265_v12 = vmul.f32 %v2746_v1, %v1226_v56 }
 0x128   :  { %v668_v15 = vsel %vm629_vm15, %v613_v59, %v652_v0  ;;  %vm630_vm2 = vcmp.ge.f32.partialorder %v614_v2, 0.0  ;;  %v653_v16 = vmul.f32 %v2716_v42, %v614_v2  ;;  %v553_v18 = vadd.f32 %v2720_v46, %v1983_v3  ;;  %v2055_v59 = vpop.f32.mrb[28].mxu1 }
 0x129   :  { %v1205_v20 = vmul.f32 %v2728_v50, %v668_v15  ;;  %v1986_v21 = vadd.f32 %v1985_v10, %v1984_v8  ;;  %vm1243_vm3 = vcmp.ge.f32.partialorder %v1227_v27, 0.0  ;;  %v1266_v35 = vmul.f32 %v2746_v1, %v1227_v27 }
 0x12a   :  { %v669_v26 = vsel %vm630_vm2, %v614_v2, %v653_v16  ;;  %v592_v32 = vmul.f32 %v2705_v36, %v553_v18  ;;  %v2849_v44 = vsel %vm1242_vm1, %v1226_v56, %v1265_v12  ;;  %v2056_v56 = vpop.f32.mrb[29].mxu1 }
 0x12b   :  { %v1228_v37 = vadd.f32 %v2738_v58, %v1205_v20  ;;  %v1206_v38 = vmul.f32 %v2728_v50, %v669_v26  ;;  %v556_v46 = vadd.f32 %v2731_v54, %v1986_v21  ;;  %v2851_v45 = vsel %vm1243_vm3, %v1227_v27, %v1266_v35  ;;  %v2058_v10 = vpop.f32.mrb[30].mxu1 }
 0x12c   :  { %v615_v41 = vadd.f32 %v2710_v39, %v592_v32  ;;  %v1987_v43 = vpop.f32.mrb[24].mxu0  ;;  %v1395_v51 = vpack.c.bf16 %v2851_v45, %v2849_v44  ;;  %v2862_v9 = vadd.f32 %v2056_v56, %v2055_v59  ;;  %v2059_v12 = vpop.f32.mrb[31].mxu1 }
 0x12d   :  { %v1229_v47 = vadd.f32 %v2738_v58, %v1206_v38  ;;  %v593_v34 = vmul.f32 %v2705_v36, %v556_v46  ;;  %v1988_v49 = vpop.f32.mrb[25].mxu0  ;;  %vm1244_vm4 = vcmp.ge.f32.partialorder %v1228_v37, 0.0  ;;  %v1267_v60 = vmul.f32 %v2746_v1, %v1228_v37 }
 0x12e   :  { %vm631_vm5 = vcmp.ge.f32.partialorder %v615_v41, 0.0  ;;  %v654_v54 = vmul.f32 %v2716_v42, %v615_v41  ;;  %v1989_v48 = vadd.f32 %v1988_v49, %v1987_v43  ;;  %v1990_v57 = vpop.f32.mrb[26].mxu0  ;;  %v2871_v19 = vadd.f32 %v2059_v12, %v2058_v10 }
 0x12f   :  { %v616_v61 = vadd.f32 %v2710_v39, %v593_v34  ;;  %v1991_v63 = vpop.f32.mrb[27].mxu0  ;;  %vm1245_vm6 = vcmp.ge.f32.partialorder %v1229_v47, 0.0  ;;  %v1268_v0 = vmul.f32 %v2746_v1, %v1229_v47  ;;  %v2867_v15 = vsel %vm1244_vm4, %v1228_v37, %v1267_v60 }
 0x130   :  { %v670_v2 = vsel %vm631_vm5, %v615_v41, %v654_v54  ;;  %v1992_v3 = vadd.f32 %v1991_v63, %v1990_v57  ;;  %v561_v8 = vadd.f32 %v1989_v48, %v2758_v17 }
 0x131   :  { %v1207_v11 = vmul.f32 %v2728_v50, %v670_v2  ;;  %vm632_vm7 = vcmp.ge.f32.partialorder %v616_v61, 0.0  ;;  %v655_v27 = vmul.f32 %v2716_v42, %v616_v61  ;;  %v2873_v20 = vsel %vm1245_vm6, %v1229_v47, %v1268_v0  ;;  %v2061_v47 = vpop.f32.mrb[32].mxu1 }
 0x132   :  { %v594_v16 = vmul.f32 %v2705_v36, %v561_v8  ;;  %v564_v18 = vadd.f32 %v1992_v3, %v2769_v28  ;;  %v1396_v21 = vpack.c.bf16 %v2873_v20, %v2867_v15  ;;  %v2062_v49 = vpop.f32.mrb[33].mxu1 }
 0x133   :  { %v671_v17 = vsel %vm632_vm7, %v616_v61, %v655_v27  ;;  %v1230_v31 = vadd.f32 %v2738_v58, %v1207_v11  ;;  %v2064_v61 = vpop.f32.mrb[34].mxu1  ;;  %v2888_v0 = vadd.f32 %v2062_v49, %v2061_v47 }
 0x134   :  { %v1208_v26 = vmul.f32 %v2728_v50, %v671_v17  ;;  %v617_v32 = vadd.f32 %v2710_v39, %v594_v16  ;;  %v595_v35 = vmul.f32 %v2705_v36, %v564_v18  ;;  %v1993_v37 = vpop.f32.mrb[28].mxu0  ;;  %v2065_v2 = vpop.f32.mrb[35].mxu1 }
 0x135   :  { %v1994_v38 = vpop.f32.mrb[29].mxu0  ;;  %vm1246_vm9 = vcmp.ge.f32.partialorder %v1230_v31, 0.0  ;;  %v1269_v48 = vmul.f32 %v2746_v1, %v1230_v31  ;;  %v2891_v10 = vadd.f32 %v2065_v2, %v2064_v61 }
 0x136   :  { %vm633_vm8 = vcmp.ge.f32.partialorder %v617_v32, 0.0  ;;  %v656_v28 = vmul.f32 %v2716_v42, %v617_v32  ;;  %v618_v46 = vadd.f32 %v2710_v39, %v595_v35  ;;  %v1995_v41 = vadd.f32 %v1994_v38, %v1993_v37  ;;  %v1996_v43 = vpop.f32.mrb[30].mxu0 }
 0x137   :  { %v1997_v34 = vpop.f32.mrb[31].mxu0  ;;  %v1231_v54 = vadd.f32 %v2738_v58, %v1208_v26  ;;  %v2899_v17 = vsel %vm1246_vm9, %v1230_v31, %v1269_v48 }
 0x138   :  { %v672_v57 = vsel %vm633_vm8, %v617_v32, %v656_v28  ;;  %vm634_vm10 = vcmp.ge.f32.partialorder %v618_v46, 0.0  ;;  %v657_v59 = vmul.f32 %v2716_v42, %v618_v46  ;;  %v569_v60 = vadd.f32 %v2755_v14, %v1995_v41  ;;  %v2067_v41 = vpop.f32.mrb[36].mxu1 }
 0x139   :  { %v1209_v63 = vmul.f32 %v2728_v50, %v672_v57  ;;  %v1998_v56 = vadd.f32 %v1997_v34, %v1996_v43  ;;  %vm1247_vm11 = vcmp.ge.f32.partialorder %v1231_v54, 0.0  ;;  %v1270_v11 = vmul.f32 %v2746_v1, %v1231_v54  ;;  %v2068_v34 = vpop.f32.mrb[37].mxu1 }
 0x13a   :  { %v673_v3 = vsel %vm634_vm10, %v618_v46, %v657_v59  ;;  %v596_v8 = vmul.f32 %v2705_v36, %v569_v60  ;;  %v2911_v48 = vadd.f32 %v2068_v34, %v2067_v41  ;;  %v2070_v57 = vpop.f32.mrb[38].mxu1 }
 0x13b   :  { %v1232_v27 = vadd.f32 %v2738_v58, %v1209_v63  ;;  %v1210_v12 = vmul.f32 %v2728_v50, %v673_v3  ;;  %v572_v14 = vadd.f32 %v2762_v23, %v1998_v56  ;;  %v2901_v26 = vsel %vm1247_vm11, %v1231_v54, %v1270_v11  ;;  %v2071_v63 = vpop.f32.mrb[39].mxu1 }
 0x13c   :  { %v619_v16 = vadd.f32 %v2710_v39, %v596_v8  ;;  %v2025_v18 = vpop.f32.mrb[32].mxu0  ;;  %v1397_v38 = vpack.c.bf16 %v2901_v26, %v2899_v17  ;;  %v2920_v56 = vadd.f32 %v2071_v63, %v2070_v57 }
 0x13d   :  { %v1233_v32 = vadd.f32 %v2738_v58, %v1210_v12  ;;  %v597_v35 = vmul.f32 %v2705_v36, %v572_v14  ;;  %v2026_v37 = vpop.f32.mrb[33].mxu0  ;;  %vm1248_vm12 = vcmp.ge.f32.partialorder %v1232_v27, 0.0  ;;  %v1271_v31 = vmul.f32 %v2746_v1, %v1232_v27 }
 0x13e   :  { %vm635_vm13 = vcmp.ge.f32.partialorder %v619_v16, 0.0  ;;  %v658_v23 = vmul.f32 %v2716_v42, %v619_v16  ;;  %v2027_v28 = vadd.f32 %v2026_v37, %v2025_v18  ;;  %v2028_v46 = vpop.f32.mrb[34].mxu0 }
 0x13f   :  { %v620_v43 = vadd.f32 %v2710_v39, %v597_v35  ;;  %v2029_v47 = vpop.f32.mrb[35].mxu0  ;;  %vm1249_vm14 = vcmp.ge.f32.partialorder %v1233_v32, 0.0  ;;  %v1272_v36 = vmul.f32 %v2746_v1, %v1233_v32  ;;  %v2914_v59 = vsel %vm1248_vm12, %v1232_v27, %v1271_v31 }
 0x140   :  { %v674_v49 = vsel %vm635_vm13, %v619_v16, %v658_v23  ;;  %v2030_v54 = vadd.f32 %v2029_v47, %v2028_v46  ;;  %v2943_v47 = vld [vmem:[%s3199_s11] ss:$0 sm:$0xff] }
 0x141   :  { %v1211_v60 = vmul.f32 %v2728_v50, %v674_v49  ;;  %vm636_vm15 = vcmp.ge.f32.partialorder %v620_v43, 0.0  ;;  %v659_v61 = vmul.f32 %v2716_v42, %v620_v43  ;;  %v2918_v39 = vsel %vm1249_vm14, %v1233_v32, %v1272_v36 }
 0x142   :  { %v1398_v2 = vpack.c.bf16 %v2918_v39, %v2914_v59 }
 0x143   :  { %v675_v3 = vsel %vm636_vm15, %v620_v43, %v659_v61  ;;  %v1234_v8 = vadd.f32 %v2738_v58, %v1211_v60  ;;  %v2949_v60 = vld [vmem:[%s3200_s12] ss:$0 sm:$0xff] }
 0x144   :  { %v1212_v11 = vmul.f32 %v2728_v50, %v675_v3  ;;  %v2031_v27 = vpop.f32.mrb[36].mxu0 }
 0x145   :  { %v2032_v12 = vpop.f32.mrb[37].mxu0  ;;  %v1273_v42 = vmul.f32 %v2746_v1, %v1234_v8  ;;  %vm1250_vm1 = vcmp.ge.f32.partialorder %v1234_v8, 0.0 }
 0x146   :  { %v2033_v14 = vadd.f32 %v2032_v12, %v2031_v27  ;;  %v2034_v16 = vpop.f32.mrb[38].mxu0  ;;  %v1235_v18 = vadd.f32 %v2738_v58, %v1212_v11  ;;  %v2938_v58 = vld [vmem:[%s3198_s10] ss:$0 sm:$0xff] }
 0x147   :  { %v2035_v32 = vpop.f32.mrb[39].mxu0  ;;  %v2929_v23 = vsel %vm1250_vm1, %v1234_v8, %v1273_v42 }
 0x148   :  { %v2036_v35 = vadd.f32 %v2035_v32, %v2034_v16  ;;  %vm1251_vm2 = vcmp.ge.f32.partialorder %v1235_v18, 0.0  ;;  %v1274_v37 = vmul.f32 %v2746_v1, %v1235_v18 }
 0x14a   :  { %v2931_v46 = vsel %vm1251_vm2, %v1235_v18, %v1274_v37 }
 0x14b   :  { %v1399_v50 = vpack.c.bf16 %v2931_v46, %v2929_v23 }
 0x14c   :  { %v2129_v41 = vpop.f32.mrb[40].mxu0 }
 0x14d   :  { %v1136_v31 = vadd.f32 %v2129_v41, %v2033_v14  ;;  %v1127_v43 = vpop.f32.mrb[41].mxu0 }
 0x14e   :  { %v1128_v1 = vadd.f32 %v2027_v28, %v1127_v43  ;;  %v2130_v34 = vpop.f32.mrb[42].mxu0 }
 0x14f   :  { %v1300_v36 = vmul.f32 %v2938_v58, %v1136_v31  ;;  %v1139_v49 = vadd.f32 %v2130_v34, %v2036_v35  ;;  %v1130_v57 = vpop.f32.mrb[43].mxu0 }
 0x150   :  { %v1298_v61 = vmul.f32 %v2938_v58, %v1128_v1  ;;  %v1131_v63 = vadd.f32 %v2030_v54, %v1130_v57 }
 0x151   :  { %v1323_v3 = vadd.f32 %v2943_v47, %v1300_v36  ;;  %v1301_v8 = vmul.f32 %v2938_v58, %v1139_v49 }
 0x152   :  { %v1321_v11 = vadd.f32 %v2943_v47, %v1298_v61  ;;  %v1299_v28 = vmul.f32 %v2938_v58, %v1131_v63 }
 0x153   :  { %vm1339_vm3 = vcmp.ge.f32.partialorder %v1323_v3, 0.0  ;;  %v1362_v27 = vmul.f32 %v2949_v60, %v1323_v3  ;;  %v1324_v12 = vadd.f32 %v2943_v47, %v1301_v8 }
 0x154   :  { %vm1337_vm4 = vcmp.ge.f32.partialorder %v1321_v11, 0.0  ;;  %v1360_v14 = vmul.f32 %v2949_v60, %v1321_v11  ;;  %v1322_v16 = vadd.f32 %v2943_v47, %v1299_v28  ;;  %v2133_v18 = vpop.f32.mrb[44].mxu0 }
 0x155   :  { %vm1340_vm5 = vcmp.ge.f32.partialorder %v1324_v12, 0.0  ;;  %v1363_v54 = vmul.f32 %v2949_v60, %v1324_v12  ;;  %v1152_v42 = vadd.f32 %v2133_v18, %v2811_v40  ;;  %v1143_v32 = vpop.f32.mrb[45].mxu0  ;;  %v1378_v35 = vsel %vm1339_vm3, %v1323_v3, %v1362_v27 }
 0x156   :  { %vm1338_vm6 = vcmp.ge.f32.partialorder %v1322_v16, 0.0  ;;  %v1361_v37 = vmul.f32 %v2949_v60, %v1322_v16  ;;  %v1144_v41 = vadd.f32 %v2789_v4, %v1143_v32  ;;  %v2134_v31 = vpop.f32.mrb[46].mxu0  ;;  %v1376_v49 = vsel %vm1337_vm4, %v1321_v11, %v1360_v14 }
 0x157   :  { %v1379_v43 = vsel %vm1340_vm5, %v1324_v12, %v1363_v54  ;;  %v1304_v1 = vmul.f32 %v2938_v58, %v1152_v42  ;;  %v1155_v34 = vadd.f32 %v2134_v31, %v2818_v52  ;;  %v1146_v36 = vpop.f32.mrb[47].mxu0  ;;  %v2318_v52 = vld [vmem:[%s3191_s13 + $0x8] sm:$0xff]  }
 0x158   :  { %v1405_v57 = vpack.c.bf16 %v1379_v43, %v1378_v35  ;;  %v1302_v61 = vmul.f32 %v2938_v58, %v1144_v41  ;;  %v1147_v40 = vadd.f32 %v2791_v5, %v1146_v36  ;;  %v1377_v63 = vsel %vm1338_vm6, %v1322_v16, %v1361_v37 }
 0x159   :  { %v1327_v3 = vadd.f32 %v2943_v47, %v1304_v1  ;;  %v1305_v8 = vmul.f32 %v2938_v58, %v1155_v34  ;;  %v1404_v4 = vpack.c.bf16 %v1377_v63, %v1376_v49 }
 0x15a   :  { %v1325_v28 = vadd.f32 %v2943_v47, %v1302_v61  ;;  %v1303_v27 = vmul.f32 %v2938_v58, %v1147_v40 }
 0x15b   :  { %vm1343_vm7 = vcmp.ge.f32.partialorder %v1327_v3, 0.0  ;;  %v1366_v11 = vmul.f32 %v2949_v60, %v1327_v3  ;;  %v1328_v12 = vadd.f32 %v2943_v47, %v1305_v8  ;;  %2147 = vmatprep.mubr.msk.bf16.mxu1 %vm356_vm0, %v1404_v4 }
 0x15c   :  { %vm1341_vm8 = vcmp.ge.f32.partialorder %v1325_v28, 0.0  ;;  %v1364_v5 = vmul.f32 %v2949_v60, %v1325_v28  ;;  %v1326_v14 = vadd.f32 %v2943_v47, %v1303_v27  ;;  %v2137_v16 = vpop.f32.mrb[48].mxu0  ;;  %2148 = vmatmul.mubr.msk.bf16.vlgmr.msra.gmra.mrb[40].mxu1 %vm356_vm0, %v1405_v57 }
 0x15d   :  { %vm1344_vm9 = vcmp.ge.f32.partialorder %v1328_v12, 0.0  ;;  %v1367_v18 = vmul.f32 %v2949_v60, %v1328_v12  ;;  %v1168_v54 = vadd.f32 %v2137_v16, %v2862_v9  ;;  %v1159_v42 = vpop.f32.mrb[49].mxu0  ;;  %2164 = vmatpush3.bf16.msra.mxu1 %v2691_v22  ;;  %v1382_v41 = vsel %vm1343_vm7, %v1327_v3, %v1366_v11 }
 0x15e   :  { %vm1342_vm10 = vcmp.ge.f32.partialorder %v1326_v14, 0.0  ;;  %v1365_v32 = vmul.f32 %v2949_v60, %v1326_v14  ;;  %v1160_v35 = vadd.f32 %v2838_v25, %v1159_v42  ;;  %v2138_v37 = vpop.f32.mrb[50].mxu0  ;;  %2165 = vmatprep.subr.bf16.mxu1 %v2318_v52  ;;  %v1380_v34 = vsel %vm1341_vm8, %v1325_v28, %v1364_v5 }
 0x15f   :  { %v1308_v31 = vmul.f32 %v2938_v58, %v1168_v54  ;;  %v1171_v43 = vadd.f32 %v2138_v37, %v2871_v19  ;;  %v1162_v1 = vpop.f32.mrb[51].mxu0  ;;  %v1383_v9 = vsel %vm1344_vm9, %v1328_v12, %v1367_v18 }
 0x160   :  { %v1306_v36 = vmul.f32 %v2938_v58, %v1160_v35  ;;  %v1163_v22 = vadd.f32 %v2841_v33, %v1162_v1  ;;  %v1381_v49 = vsel %vm1342_vm10, %v1326_v14, %v1365_v32  ;;  %v1407_v57 = vpack.c.bf16 %v1383_v9, %v1382_v41 }
 0x161   :  { %v1331_v25 = vadd.f32 %v2943_v47, %v1308_v31  ;;  %v1309_v61 = vmul.f32 %v2938_v58, %v1171_v43  ;;  %v1406_v40 = vpack.c.bf16 %v1381_v49, %v1380_v34  ;;  %2166 = vmatpush3.bf16.msra.mxu1 %v2318_v52 }
 0x162   :  { %v1329_v63 = vadd.f32 %v2943_v47, %v1306_v36  ;;  %v1307_v19 = vmul.f32 %v2938_v58, %v1163_v22 }
 0x163   :  { %vm1347_vm11 = vcmp.ge.f32.partialorder %v1331_v25, 0.0  ;;  %v1370_v3 = vmul.f32 %v2949_v60, %v1331_v25  ;;  %v1332_v8 = vadd.f32 %v2943_v47, %v1309_v61  ;;  %2151 = vmatprep.mubr.msk.bf16.mxu1 %vm356_vm0, %v1406_v40 }
 0x164   :  { %vm1345_vm12 = vcmp.ge.f32.partialorder %v1329_v63, 0.0  ;;  %v1368_v33 = vmul.f32 %v2949_v60, %v1329_v63  ;;  %v1330_v4 = vadd.f32 %v2943_v47, %v1307_v19  ;;  %v2141_v28 = vpop.f32.mrb[52].mxu0  ;;  %2152 = vmatmul.mubr.msk.bf16.gmra.mrb[44].mxu1 %vm356_vm0, %v1407_v57 }
 0x165   :  { %vm1348_vm13 = vcmp.ge.f32.partialorder %v1332_v8, 0.0  ;;  %v1371_v27 = vmul.f32 %v2949_v60, %v1332_v8  ;;  %v1184_v52 = vadd.f32 %v2141_v28, %v2911_v48  ;;  %v1175_v11 = vpop.f32.mrb[53].mxu0  ;;  %v1386_v16 = vsel %vm1347_vm11, %v1331_v25, %v1370_v3 }
 0x166   :  { %vm1346_vm14 = vcmp.ge.f32.partialorder %v1330_v4, 0.0  ;;  %v1369_v12 = vmul.f32 %v2949_v60, %v1330_v4  ;;  %v1176_v5 = vadd.f32 %v2888_v0, %v1175_v11  ;;  %v2142_v14 = vpop.f32.mrb[54].mxu0  ;;  %v1384_v32 = vsel %vm1345_vm12, %v1329_v63, %v1368_v33 }
 0x167   :  { %v1312_v18 = vmul.f32 %v2938_v58, %v1184_v52  ;;  %v1187_v54 = vadd.f32 %v2142_v14, %v2920_v56  ;;  %v1178_v42 = vpop.f32.mrb[55].mxu0  ;;  %v1387_v35 = vsel %vm1348_vm13, %v1332_v8, %v1371_v27 }
 0x168   :  { %v1310_v37 = vmul.f32 %v2938_v58, %v1176_v5  ;;  %v1179_v48 = vadd.f32 %v2891_v10, %v1178_v42  ;;  %v1385_v41 = vsel %vm1346_vm14, %v1330_v4, %v1369_v12  ;;  %v1409_v31 = vpack.c.bf16 %v1387_v35, %v1386_v16 }
 0x169   :  { %v1335_v43 = vadd.f32 %v2943_v47, %v1312_v18  ;;  %v1313_v0 = vmul.f32 %v2938_v58, %v1187_v54  ;;  %v1408_v1 = vpack.c.bf16 %v1385_v41, %v1384_v32 }
 0x16a   :  { %v1333_v34 = vadd.f32 %v2943_v47, %v1310_v37  ;;  %v1311_v9 = vmul.f32 %v2938_v58, %v1179_v48 }
 0x16b   :  { %v1374_v56 = vmul.f32 %v2949_v60, %v1335_v43  ;;  %v1336_v36 = vadd.f32 %v2943_v47, %v1313_v0  ;;  %2155 = vmatprep.mubr.msk.bf16.mxu1 %vm356_vm0, %v1408_v1  ;;  %vm1351_vm15 = vcmp.ge.f32.partialorder %v1335_v43, 0.0 }
 0x16c   :  { %v1372_v10 = vmul.f32 %v2949_v60, %v1333_v34  ;;  %v1334_v22 = vadd.f32 %v2943_v47, %v1311_v9  ;;  %2156 = vmatmul.mubr.msk.bf16.gmra.mrb[48].mxu1 %vm356_vm0, %v1409_v31  ;;  %vm1349_vm1 = vcmp.ge.f32.partialorder %v1333_v34, 0.0 }
 0x16d   :  { %vm1352_vm2 = vcmp.ge.f32.partialorder %v1336_v36, 0.0  ;;  %v1375_v49 = vmul.f32 %v2949_v60, %v1336_v36  ;;  %v1390_v57 = vsel %vm1351_vm15, %v1335_v43, %v1374_v56 }
 0x16e   :  { %vm1350_vm3 = vcmp.ge.f32.partialorder %v1334_v22, 0.0  ;;  %v1373_v58 = vmul.f32 %v2949_v60, %v1334_v22  ;;  %v1388_v61 = vsel %vm1349_vm1, %v1333_v34, %v1372_v10 }
 0x16f   :  { %v1391_v25 = vsel %vm1352_vm2, %v1336_v36, %v1375_v49 }
 0x170   :  { %v1389_v40 = vsel %vm1350_vm3, %v1334_v22, %v1373_v58  ;;  %v1411_v63 = vpack.c.bf16 %v1391_v25, %v1390_v57 }
 0x171   :  { %v1410_v19 = vpack.c.bf16 %v1389_v40, %v1388_v61 }
 0x173   :  { %2159 = vmatprep.mubr.msk.bf16.mxu1 %vm356_vm0, %v1410_v19 }
 0x174   :  { %2160 = vmatmul.mubr.msk.bf16.gmra.mrb[52].mxu1 %vm356_vm0, %v1411_v63 }
 0x175   :  { %2167 = vmatprep.mubr.msk.bf16.mxu1 %vm356_vm0, %v1392_v29  ;;  %v3067_v29 = vld [vmem:[%s3202_s16] ss:$0 sm:$0xff] }
 0x17c   :  { %2168 = vmatmul.mubr.msk.bf16.vlgmr.msra.gmra.mrb[40].mxu1 %vm356_vm0, %v1393_v13  ;;  %v3073_v13 = vld [vmem:[%s3203_s17] ss:$0 sm:$0xff] }
 0x17d   :  { %2171 = vmatprep.mubr.msk.bf16.mxu1 %vm356_vm0, %v1394_v62 }
 0x184   :  { %2172 = vmatmul.mubr.msk.bf16.gmra.mrb[44].mxu1 %vm356_vm0, %v1395_v51 }
 0x185   :  { %2175 = vmatprep.mubr.msk.bf16.mxu1 %vm356_vm0, %v1396_v21 }
 0x18c   :  { %2176 = vmatmul.mubr.msk.bf16.gmra.mrb[48].mxu1 %vm356_vm0, %v1397_v38 }
 0x18d   :  { %2179 = vmatprep.mubr.msk.bf16.mxu1 %vm356_vm0, %v1398_v2 }
 0x194   :  { %2180 = vmatmul.mubr.msk.bf16.gmra.mrb[52].mxu1 %vm356_vm0, %v1399_v50 }
 0x24f   :  { %v2169_v30 = vpop.f32.mrb[40].mxu1 }
 0x250   :  { %v1691_v6 = vmul.f32 %v2169_v30, %v3062_v24  ;;  %v1619_v7 = vpop.f32.mrb[41].mxu1 }
 0x251   :  { %v1689_v53 = vmul.f32 %v3062_v24, %v1619_v7  ;;  %v2170_v55 = vpop.f32.mrb[42].mxu1 }
 0x252   :  { %v1714_v62 = vadd.f32 %v3067_v29, %v1691_v6  ;;  %v1692_v44 = vmul.f32 %v2170_v55, %v3062_v24  ;;  %v1622_v45 = vpop.f32.mrb[43].mxu1 }
 0x253   :  { %v1712_v51 = vadd.f32 %v3067_v29, %v1689_v53  ;;  %v1690_v15 = vmul.f32 %v3062_v24, %v1622_v45 }
 0x254   :  { %vm1730_vm4 = vcmp.ge.f32.partialorder %v1714_v62, 0.0  ;;  %v1753_v20 = vmul.f32 %v3073_v13, %v1714_v62  ;;  %v1715_v21 = vadd.f32 %v3067_v29, %v1692_v44 }
 0x255   :  { %vm1728_vm5 = vcmp.ge.f32.partialorder %v1712_v51, 0.0  ;;  %v1751_v17 = vmul.f32 %v3073_v13, %v1712_v51  ;;  %v1713_v26 = vadd.f32 %v3067_v29, %v1690_v15 }
 0x256   :  { %v1769_v38 = vsel %vm1730_vm4, %v1714_v62, %v1753_v20  ;;  %vm1731_vm6 = vcmp.ge.f32.partialorder %v1715_v21, 0.0  ;;  %v1754_v59 = vmul.f32 %v3073_v13, %v1715_v21 }
 0x257   :  { %1785 = vst.msk [vmem:[%s3204_s18 + $0x10] sm:$0xff] %vm356_vm0, %v1769_v38  ;;  %v1767_v39 = vsel %vm1728_vm5, %v1712_v51, %v1751_v17  ;;  %vm1729_vm7 = vcmp.ge.f32.partialorder %v1713_v26, 0.0  ;;  %v1752_v2 = vmul.f32 %v3073_v13, %v1713_v26  ;;  %v2173_v23 = vpop.f32.mrb[44].mxu1 }
 0x258   :  { %1783 = vst.msk [vmem:[%s3204_s18] sm:$0xff] %vm356_vm0, %v1767_v39  ;;  %v1770_v46 = vsel %vm1731_vm6, %v1715_v21, %v1754_v59  ;;  %v1695_v50 = vmul.f32 %v2173_v23, %v3062_v24  ;;  %v1635_v47 = vpop.f32.mrb[45].mxu1 }
 0x259   :  { %1786 = vst.msk [vmem:[%s3204_s18 + $0x18] sm:$0xff] %vm356_vm0, %v1770_v46  ;;  %v1768_v60 = vsel %vm1729_vm7, %v1713_v26, %v1752_v2  ;;  %v1693_v3 = vmul.f32 %v3062_v24, %v1635_v47  ;;  %v2174_v8 = vpop.f32.mrb[46].mxu1 }
 0x25a   :  { %1784 = vst.msk [vmem:[%s3204_s18 + $0x8] sm:$0xff] %vm356_vm0, %v1768_v60  ;;  %v1718_v33 = vadd.f32 %v3067_v29, %v1695_v50  ;;  %v1696_v4 = vmul.f32 %v2174_v8, %v3062_v24  ;;  %v1638_v28 = vpop.f32.mrb[47].mxu1 }
 0x25b   :  { %v1716_v27 = vadd.f32 %v3067_v29, %v1693_v3  ;;  %v1694_v52 = vmul.f32 %v3062_v24, %v1638_v28 }
 0x25c   :  { %vm1734_vm8 = vcmp.ge.f32.partialorder %v1718_v33, 0.0  ;;  %v1757_v11 = vmul.f32 %v3073_v13, %v1718_v33  ;;  %v1719_v12 = vadd.f32 %v3067_v29, %v1696_v4 }
 0x25d   :  { %vm1732_vm9 = vcmp.ge.f32.partialorder %v1716_v27, 0.0  ;;  %v1755_v5 = vmul.f32 %v3073_v13, %v1716_v27  ;;  %v1717_v14 = vadd.f32 %v3067_v29, %v1694_v52 }
 0x25e   :  { %v1773_v16 = vsel %vm1734_vm8, %v1718_v33, %v1757_v11  ;;  %vm1735_vm10 = vcmp.ge.f32.partialorder %v1719_v12, 0.0  ;;  %v1758_v18 = vmul.f32 %v3073_v13, %v1719_v12 }
 0x25f   :  { %1789 = vst.msk [vmem:[%s3204_s18 + $0x30] sm:$0xff] %vm356_vm0, %v1773_v16  ;;  %v1771_v54 = vsel %vm1732_vm9, %v1716_v27, %v1755_v5  ;;  %vm1733_vm11 = vcmp.ge.f32.partialorder %v1717_v14, 0.0  ;;  %v1756_v42 = vmul.f32 %v3073_v13, %v1717_v14  ;;  %v2177_v32 = vpop.f32.mrb[48].mxu1 }
 0x260   :  { %1787 = vst.msk [vmem:[%s3204_s18 + $0x20] sm:$0xff] %vm356_vm0, %v1771_v54  ;;  %v1774_v35 = vsel %vm1735_vm10, %v1719_v12, %v1758_v18  ;;  %v1699_v37 = vmul.f32 %v2177_v32, %v3062_v24  ;;  %v1651_v48 = vpop.f32.mrb[49].mxu1 }
 0x261   :  { %1790 = vst.msk [vmem:[%s3204_s18 + $0x38] sm:$0xff] %vm356_vm0, %v1774_v35  ;;  %v1772_v41 = vsel %vm1733_vm11, %v1717_v14, %v1756_v42  ;;  %v1697_v31 = vmul.f32 %v3062_v24, %v1651_v48  ;;  %v2178_v43 = vpop.f32.mrb[50].mxu1 }
 0x262   :  { %1788 = vst.msk [vmem:[%s3204_s18 + $0x28] sm:$0xff] %vm356_vm0, %v1772_v41  ;;  %v1722_v0 = vadd.f32 %v3067_v29, %v1699_v37  ;;  %v1700_v1 = vmul.f32 %v2178_v43, %v3062_v24  ;;  %v1654_v34 = vpop.f32.mrb[51].mxu1 }
 0x263   :  { %v1720_v9 = vadd.f32 %v3067_v29, %v1697_v31  ;;  %v1698_v56 = vmul.f32 %v3062_v24, %v1654_v34 }
 0x264   :  { %vm1738_vm12 = vcmp.ge.f32.partialorder %v1722_v0, 0.0  ;;  %v1761_v36 = vmul.f32 %v3073_v13, %v1722_v0  ;;  %v1723_v10 = vadd.f32 %v3067_v29, %v1700_v1 }
 0x265   :  { %vm1736_vm13 = vcmp.ge.f32.partialorder %v1720_v9, 0.0  ;;  %v1759_v22 = vmul.f32 %v3073_v13, %v1720_v9  ;;  %v1721_v49 = vadd.f32 %v3067_v29, %v1698_v56 }
 0x266   :  { %v1777_v58 = vsel %vm1738_vm12, %v1722_v0, %v1761_v36  ;;  %vm1739_vm14 = vcmp.ge.f32.partialorder %v1723_v10, 0.0  ;;  %v1762_v57 = vmul.f32 %v3073_v13, %v1723_v10 }
 0x267   :  { %1793 = vst.msk [vmem:[%s3204_s18 + $0x50] sm:$0xff] %vm356_vm0, %v1777_v58  ;;  %v1775_v25 = vsel %vm1736_vm13, %v1720_v9, %v1759_v22  ;;  %vm1737_vm15 = vcmp.ge.f32.partialorder %v1721_v49, 0.0  ;;  %v1760_v61 = vmul.f32 %v3073_v13, %v1721_v49  ;;  %v2181_v40 = vpop.f32.mrb[52].mxu1 }
 0x268   :  { %1791 = vst.msk [vmem:[%s3204_s18 + $0x40] sm:$0xff] %vm356_vm0, %v1775_v25  ;;  %v1778_v63 = vsel %vm1739_vm14, %v1723_v10, %v1762_v57  ;;  %v1703_v19 = vmul.f32 %v2181_v40, %v3062_v24  ;;  %v1667_v30 = vpop.f32.mrb[53].mxu1 }
 0x269   :  { %1794 = vst.msk [vmem:[%s3204_s18 + $0x58] sm:$0xff] %vm356_vm0, %v1778_v63  ;;  %v1776_v6 = vsel %vm1737_vm15, %v1721_v49, %v1760_v61  ;;  %v1701_v7 = vmul.f32 %v3062_v24, %v1667_v30  ;;  %v2182_v53 = vpop.f32.mrb[54].mxu1 }
 0x26a   :  { %1792 = vst.msk [vmem:[%s3204_s18 + $0x48] sm:$0xff] %vm356_vm0, %v1776_v6  ;;  %v1726_v55 = vadd.f32 %v3067_v29, %v1703_v19  ;;  %v1704_v62 = vmul.f32 %v2182_v53, %v3062_v24  ;;  %v1670_v44 = vpop.f32.mrb[55].mxu1 }
 0x26b   :  { %v1724_v45 = vadd.f32 %v3067_v29, %v1701_v7  ;;  %v1702_v51 = vmul.f32 %v3062_v24, %v1670_v44 }
 0x26c   :  { %vm1742_vm1 = vcmp.ge.f32.partialorder %v1726_v55, 0.0  ;;  %v1765_v15 = vmul.f32 %v3073_v13, %v1726_v55  ;;  %v1727_v20 = vadd.f32 %v3067_v29, %v1704_v62 }
 0x26d   :  { %vm1740_vm2 = vcmp.ge.f32.partialorder %v1724_v45, 0.0  ;;  %v1763_v21 = vmul.f32 %v3073_v13, %v1724_v45  ;;  %v1725_v17 = vadd.f32 %v3067_v29, %v1702_v51 }
 0x26e   :  { %v1781_v26 = vsel %vm1742_vm1, %v1726_v55, %v1765_v15  ;;  %vm1743_vm3 = vcmp.ge.f32.partialorder %v1727_v20, 0.0  ;;  %v1766_v38 = vmul.f32 %v3073_v13, %v1727_v20 }
 0x26f   :  { %1797 = vst.msk [vmem:[%s3204_s18 + $0x70] sm:$0xff] %vm356_vm0, %v1781_v26  ;;  %v1779_v24 = vsel %vm1740_vm2, %v1724_v45, %v1763_v21  ;;  %vm1741_vm4 = vcmp.ge.f32.partialorder %v1725_v17, 0.0  ;;  %v1764_v59 = vmul.f32 %v3073_v13, %v1725_v17 }
 0x270   :  { %1795 = vst.msk [vmem:[%s3204_s18 + $0x60] sm:$0xff] %vm356_vm0, %v1779_v24  ;;  %v1782_v39 = vsel %vm1743_vm3, %v1727_v20, %v1766_v38 }
 0x271   :  { %1798 = vst.msk [vmem:[%s3204_s18 + $0x78] sm:$0xff] %vm356_vm0, %v1782_v39  ;;  %v1780_v29 = vsel %vm1741_vm4, %v1725_v17, %v1764_v59 }
 0x272   :  { %1796 = vst.msk [vmem:[%s3204_s18 + $0x68] sm:$0xff] %vm356_vm0, %v1780_v29 }

</bundles_post_ra>
